<compile_context>
chip_gen: v5e
topology: v5e:2x2
jax: 0.10.0
libtpu: 0.0.40
codegen_flags: <defaults>
</compile_context>

<pallas_src>
import functools

import jax
import jax.numpy as jnp
from jax.experimental import pallas as pl
from jax.experimental.pallas import tpu as pltpu


def _round_up(n, m):
  return ((n + m - 1) // m) * m


def _vmem_capacity_bytes():
  try:
    return int(pltpu.get_tpu_info().vmem_capacity_bytes)
  except Exception:
    return 64 * 1024 * 1024          # conservative (v7x per-core VMEM)


def _default_bf16_gates():
  """bf16 EUP exists on v6e/v7x; keep f32 gate math on v5e and older."""
  try:
    kind = jax.devices()[0].device_kind.lower()
  except Exception:
    return False
  return ("v6" in kind) or ("v7" in kind)


def _vmem_budget_bytes(ts, b_pad, h):
  """VMEM needed by one bidirectional-layer kernel invocation (bytes)."""
  g = 4 * h
  gx = 2 * 2 * ts * b_pad * g * 2          # 2 dirs x double-buffered, bf16
  outs = 2 * 2 * ts * b_pad * h * 2        # 2 dirs x double-buffered, bf16
  w = 2 * h * g * 2                        # single-buffered weight scratch
  state = 2 * b_pad * h * 2 + 2 * b_pad * h * 4   # h (bf16) + c (f32)
  lens = 2 * b_pad * 4
  return gx + outs + w + state + lens


def _auto_time_chunk(b_pad, h, t):
  """Largest chunk whose double-buffered blocks fit in ~half of VMEM."""
  cap = _vmem_capacity_bytes()
  ts = 8
  for cand in (64, 32, 16, 8):
    if _vmem_budget_bytes(cand, b_pad, h) <= cap // 2:
      ts = cand
      break
  return min(ts, max(8, _round_up(t, 8)))   # don't pad far past the sequence


def _gate_nonlin(pre, H, bf16_gates):
  """i,f,g,o activations; sigmoid(x) == 0.5*tanh(0.5x)+0.5 (one EUP op)."""
  if bf16_gates:
    pre = pre.astype(jnp.bfloat16)
  i = 0.5 * jnp.tanh(0.5 * pre[:, 0 * H:1 * H]) + 0.5
  f = 0.5 * jnp.tanh(0.5 * pre[:, 1 * H:2 * H]) + 0.5
  g = jnp.tanh(pre[:, 2 * H:3 * H])
  o = 0.5 * jnp.tanh(0.5 * pre[:, 3 * H:4 * H]) + 0.5
  return i, f, g, o


def _cell_update(pre, c_prev, H, bf16_gates):
  """Shared LSTM cell math (kernel and reference use the same numerics)."""
  i, f, g, o = _gate_nonlin(pre, H, bf16_gates)
  c_new = f * c_prev + i * g                       # f32 cell state
  if bf16_gates:
    tanh_c = jnp.tanh(c_new.astype(jnp.bfloat16))
  else:
    tanh_c = jnp.tanh(c_new)
  h_new = (o * tanh_c).astype(jnp.bfloat16)        # bf16 hidden state
  return h_new, c_new


# ----------------------------------------------------------------------------
# Pallas kernel: one bidirectional LSTM layer, grid over chunks of TS steps.
# Hidden / cell states and the (single-buffered) recurrent weights live in
# VMEM scratch and persist across grid steps.  Inputs are the pre-computed
# gate pre-activations gx = x @ W_ih + b, stored bf16.
# ----------------------------------------------------------------------------
def _bilstm_chunk_kernel(len_ref, gf_ref, gb_ref, whh_f_hbm, whh_b_hbm,
                         outf_ref, outb_ref,
                         hf, cf, hb, cb, wf_v, wb_v, wsem,
                         *, bf16_gates, unroll):
  c = pl.program_id(0)
  ts = gf_ref.shape[0]                      # timesteps per chunk (static)
  t_total = pl.num_programs(0) * ts         # padded sequence length
  H = hf.shape[-1]

  @pl.when(c == 0)
  def _init():
    # One-time weight load into single-buffered VMEM scratch (no dead
    # second pipeline buffer), overlapped with the state-zeroing VPU work.
    cp_f = pltpu.make_async_copy(whh_f_hbm, wf_v, wsem.at[0])
    cp_b = pltpu.make_async_copy(whh_b_hbm, wb_v, wsem.at[1])
    cp_f.start()
    cp_b.start()
    hf[...] = jnp.zeros_like(hf)
    cf[...] = jnp.zeros_like(cf)
    hb[...] = jnp.zeros_like(hb)
    cb[...] = jnp.zeros_like(cb)
    cp_f.wait()
    cp_b.wait()

  lens = len_ref[...]                       # (B, 1) int32 sequence lengths
  whh_f = wf_v[...]                         # (H, 4H) bf16, resident in VMEM
  whh_b = wb_v[...]

  def step(s, carry):
    h_f, c_f, h_b, c_b = carry

    # ---------- forward direction: absolute time t = c*ts + s -------------
    t_fwd = c * ts + s
    m_f = lens > t_fwd                                        # (B, 1) bool
    pre_f = gf_ref[s] + jnp.dot(h_f, whh_f,
                                preferred_element_type=jnp.float32)
    h_new, c_new = _cell_update(pre_f, c_f, H, bf16_gates)
    h_f = jnp.where(m_f, h_new, h_f)        # hold state past sequence end
    c_f = jnp.where(m_f, c_new, c_f)
    outf_ref[s] = jnp.where(m_f, h_new,
                            jnp.zeros_like(h_new)).astype(outf_ref.dtype)

    # ---------- backward direction: mirrored chunk, runs tail -> head ------
    # Padding is a contiguous tail (pack_padded semantics): state is held at
    # 0 while masked, so the recurrence restarts exactly at t = length-1.
    sl = ts - 1 - s                         # local index inside mirror chunk
    t_bwd = t_total - 1 - (c * ts + s)
    m_b = lens > t_bwd
    pre_b = gb_ref[sl] + jnp.dot(h_b, whh_b,
                                 preferred_element_type=jnp.float32)
    h_new, c_new = _cell_update(pre_b, c_b, H, bf16_gates)
    h_b = jnp.where(m_b, h_new, h_b)
    c_b = jnp.where(m_b, c_new, c_b)
    outb_ref[sl] = jnp.where(m_b, h_new,
                             jnp.zeros_like(h_new)).astype(outb_ref.dtype)

    return h_f, c_f, h_b, c_b

  carry0 = (hf[...], cf[...], hb[...], cb[...])
  h_f, c_f, h_b, c_b = jax.lax.fori_loop(0, ts, step, carry0, unroll=unroll)
  hf[...] = h_f
  cf[...] = c_f
  hb[...] = h_b
  cb[...] = c_b


def _pallas_bilstm_layer(gx_f, gx_b, whh_f, whh_b, lengths_col, *, ts,
                         bf16_gates):
  """One bidirectional LSTM layer (recurrent part only).

  gx_f, gx_b : (T_pad, B_pad, 4H) bf16  pre-activations (x @ W_ih + b)
  whh_f/whh_b: (H, 4H)                  recurrent weights
  lengths_col: (B_pad, 1) int32         per-row valid lengths
  returns    : out_f, out_b each (T_pad, B_pad, H) bf16
  """
  T_pad, B_pad, G = gx_f.shape
  H = G // 4
  assert T_pad % ts == 0
  C = T_pad // ts

  # Cap the unroll so the live gate set does not spill the 64-vreg file at
  # large H.
  unroll = min(ts, 8) if H < 512 else 4

  grid_spec = pltpu.PrefetchScalarGridSpec(
      num_scalar_prefetch=0,
      grid=(C,),
      in_specs=[
          pl.BlockSpec((B_pad, 1), lambda c: (0, 0)),                # lengths
          pl.BlockSpec((ts, B_pad, G), lambda c: (c, 0, 0)),         # gx fwd
          pl.BlockSpec((ts, B_pad, G), lambda c: (C - 1 - c, 0, 0)), # gx bwd
          pl.BlockSpec(memory_space=pl.ANY),                         # W_hh fwd (HBM)
          pl.BlockSpec(memory_space=pl.ANY),                         # W_hh bwd (HBM)
      ],
      out_specs=[
          pl.BlockSpec((ts, B_pad, H), lambda c: (c, 0, 0)),         # out fwd
          pl.BlockSpec((ts, B_pad, H), lambda c: (C - 1 - c, 0, 0)), # out bwd
      ],
      scratch_shapes=[
          pltpu.VMEM((B_pad, H), jnp.bfloat16),   # h fwd (bf16 -> MXU LHS)
          pltpu.VMEM((B_pad, H), jnp.float32),    # c fwd (f32)
          pltpu.VMEM((B_pad, H), jnp.bfloat16),   # h bwd
          pltpu.VMEM((B_pad, H), jnp.float32),    # c bwd
          pltpu.VMEM((H, G), jnp.bfloat16),       # W_hh fwd (single copy)
          pltpu.VMEM((H, G), jnp.bfloat16),       # W_hh bwd (single copy)
          pltpu.SemaphoreType.DMA((2,)),          # weight-load semaphores
      ],
  )

  cap = _vmem_capacity_bytes()
  vmem_limit = min(int(cap * 0.9),
                   max(32 * 1024 * 1024,
                       int(_vmem_budget_bytes(ts, B_pad, H) * 1.3) + (2 << 20)))

  kernel = functools.partial(_bilstm_chunk_kernel, bf16_gates=bf16_gates,
                             unroll=unroll)

  out_f, out_b = pl.pallas_call(
      kernel,
      out_shape=(
          jax.ShapeDtypeStruct((T_pad, B_pad, H), jnp.bfloat16),
          jax.ShapeDtypeStruct((T_pad, B_pad, H), jnp.bfloat16),
      ),
      grid_spec=grid_spec,
      compiler_params=pltpu.CompilerParams(
          dimension_semantics=("arbitrary",),   # time recurrence is serial
          vmem_limit_bytes=vmem_limit,
      ),
  )(lengths_col, gx_f, gx_b,
    whh_f.astype(jnp.bfloat16), whh_b.astype(jnp.bfloat16))
  return out_f, out_b


# ----------------------------------------------------------------------------
# Pure-JAX reference recurrence (lax.scan) with identical numerics — used
# only for the correctness check in __main__.
# ----------------------------------------------------------------------------
def _reference_bilstm_layer(gx_f, gx_b, whh_f, whh_b, lengths_col, *,
                            bf16_gates):
  T_pad, B_pad, G = gx_f.shape
  H = G // 4

  def make_step(whh):
    whh = whh.astype(jnp.bfloat16)

    def step(carry, inp):
      h, c = carry
      gx_t, t = inp
      pre = gx_t + jnp.dot(h, whh, preferred_element_type=jnp.float32)
      h_new, c_new = _cell_update(pre, c, H, bf16_gates)
      m = lengths_col > t
      h = jnp.where(m, h_new, h)
      c = jnp.where(m, c_new, c)
      return (h, c), jnp.where(m, h_new, jnp.zeros_like(h_new))

    return step

  h0 = jnp.zeros((B_pad, H), jnp.bfloat16)
  c0 = jnp.zeros((B_pad, H), jnp.float32)
  t_idx = jnp.arange(T_pad, dtype=jnp.int32)

  _, out_f = jax.lax.scan(make_step(whh_f), (h0, c0), (gx_f, t_idx))
  _, out_b_rev = jax.lax.scan(make_step(whh_b), (h0, c0),
                              (gx_b[::-1], t_idx[::-1]))
  return out_f, out_b_rev[::-1]


# ----------------------------------------------------------------------------
# Module-level forward.
# ----------------------------------------------------------------------------
def _input_projection(parts, wih, bias):
  """sum_i parts[i] @ wih[rows_i] + bias, over all timesteps at once.

  This is the hoisted, fully time-parallel half of the LSTM: near-peak MXU
  (bf16 inputs, f32 accumulation).  Taking the previous layer's fwd / bwd
  halves as separate `parts` avoids materializing their concat in HBM.
  The result is stored bf16 (halves the HBM stream into the serial kernel);
  the in-kernel add back to the f32 recurrent matmul keeps f32 precision.
  """
  acc = None
  off = 0
  for part in parts:
    d = part.shape[-1]
    w = wih[off:off + d]
    y = jnp.einsum("tbd,dg->tbg",
                   part.astype(jnp.bfloat16), w.astype(jnp.bfloat16),
                   preferred_element_type=jnp.float32)
    acc = y if acc is None else acc + y
    off += d
  acc = acc + bias[None, None, :].astype(jnp.float32)
  return acc.astype(jnp.bfloat16)


def _forward_impl(x, x_mask, layer_params, concat_layers, time_chunk,
                  use_pallas, bf16_gates):
  """x: (B, T, D) float, x_mask: (B, T) with 1 at padding (0 = valid)."""
  B, T, D = x.shape
  lengths = jnp.sum((x_mask == 0).astype(jnp.int32), axis=1)        # (B,)

  if bf16_gates is None:
    bf16_gates = _default_bf16_gates()

  H = layer_params[0]["whh_f"].shape[0]
  B_pad = _round_up(B, 16)                 # bf16 packs 16 rows per vreg
  ts = int(time_chunk) if time_chunk is not None else \
      _auto_time_chunk(B_pad, H, T)
  T_pad = _round_up(max(T, ts), ts)        # multiple of the time chunk

  x_tm = jnp.transpose(x, (1, 0, 2)).astype(jnp.float32)            # (T, B, D)
  x_tm = jnp.pad(x_tm, ((0, T_pad - T), (0, B_pad - B), (0, 0)))
  lengths_col = jnp.pad(lengths, (0, B_pad - B)).astype(jnp.int32)[:, None]

  if use_pallas:
    layer_fn = functools.partial(_pallas_bilstm_layer, ts=ts,
                                 bf16_gates=bf16_gates)
  else:
    layer_fn = functools.partial(_reference_bilstm_layer,
                                 bf16_gates=bf16_gates)

  # TODO(synk): dropout between layers is identity here (dropout_rate=0.0 /
  # eval mode); the sort/pack/unsort of the PyTorch module cancels out under
  # length-masking.
  parts = [x_tm]
  feats = []
  for p in layer_params:
    gx_f = _input_projection(parts, p["wih_f"], p["b_f"])
    gx_b = _input_projection(parts, p["wih_b"], p["b_b"])
    out_f, out_b = layer_fn(gx_f, gx_b, p["whh_f"], p["whh_b"], lengths_col)
    parts = [out_f, out_b]       # next layer consumes halves separately
    feats.extend([out_f, out_b])

  if not concat_layers:
    feats = feats[-2:]
  out = jnp.concatenate(feats, axis=-1)          # (T_pad, B_pad, F) bf16
  out = out[:T, :B]
  return jnp.transpose(out, (1, 0, 2)).astype(jnp.float32)   # (B, T, F)


def bidirectional_rnn_forward(x, x_mask, layer_params, concat_layers=True,
                              time_chunk=None, bf16_gates=None):
  return _forward_impl(x, x_mask, layer_params, concat_layers, time_chunk,
                       use_pallas=True, bf16_gates=bf16_gates)


def bidirectional_rnn_reference(x, x_mask, layer_params, concat_layers=True,
                                time_chunk=None, bf16_gates=None):
  return _forward_impl(x, x_mask, layer_params, concat_layers, time_chunk,
                       use_pallas=False, bf16_gates=bf16_gates)


def init_params(key, input_size, hidden_size, num_layers):
  """PyTorch-LSTM-style init: U(-1/sqrt(H), 1/sqrt(H)); gate order i|f|g|o.

  Note: real PyTorch weights are (4H, D) and must be transposed (and
  b_ih + b_hh summed) to load into this layout.
  """
  H = hidden_size
  k = 1.0 / jnp.sqrt(jnp.float32(H))
  params = []
  for layer in range(num_layers):
    D = input_size if layer == 0 else 2 * hidden_size
    keys = jax.random.split(jax.random.fold_in(key, layer), 8)

    def u(kk, shape):
      return jax.random.uniform(kk, shape, jnp.float32, -k, k)

    params.append({
        "wih_f": u(keys[0], (D, 4 * H)),
        "whh_f": u(keys[1], (H, 4 * H)).astype(jnp.bfloat16),
        "b_f":   (u(keys[2], (4 * H,)) + u(keys[3], (4 * H,))),
        "wih_b": u(keys[4], (D, 4 * H)),
        "whh_b": u(keys[5], (H, 4 * H)).astype(jnp.bfloat16),
        "b_b":   (u(keys[6], (4 * H,)) + u(keys[7], (4 * H,))),
    })
  return params


if __name__ == "__main__":
  B, T, D, H = 2, 8, 16, 32
  num_layers = 2
  concat_layers = True
  time_chunk = 4     # -> grid of 2 chunks: exercises the chunked recurrence

  key = jax.random.PRNGKey(0)
  kx, kp = jax.random.split(key)
  x = jax.random.normal(kx, (B, T, D), jnp.float32)

  # x_mask: 1 at padding, 0 at valid. lengths = [8, 5]
  lengths = jnp.array([8, 5], dtype=jnp.int32)
  x_mask = (jnp.arange(T)[None, :] >= lengths[:, None]).astype(jnp.int32)

  params = init_params(kp, D, H, num_layers)

  fwd = jax.jit(functools.partial(bidirectional_rnn_forward,
                                  concat_layers=concat_layers,
                                  time_chunk=time_chunk))
  out = jax.block_until_ready(fwd(x, x_mask, params))

  expected_feat = num_layers * 2 * H if concat_layers else 2 * H
  assert out.shape == (B, T, expected_feat), out.shape
  # padded timesteps must be exactly zero (pad_packed_sequence semantics)
  assert bool(jnp.all(out[1, 5:, :] == 0.0))

  # correctness check against a pure-JAX lax.scan reference (same numerics)
  ref = jax.jit(functools.partial(bidirectional_rnn_reference,
                                  concat_layers=concat_layers,
                                  time_chunk=time_chunk))
  out_ref = jax.block_until_ready(ref(x, x_mask, params))
  assert bool(jnp.allclose(out, out_ref, atol=5e-2, rtol=5e-2)), \
      float(jnp.max(jnp.abs(out - out_ref)))

  # also exercise the VMEM-budget-driven automatic time-chunk path
  fwd_auto = jax.jit(functools.partial(bidirectional_rnn_forward,
                                       concat_layers=concat_layers))
  out_auto = jax.block_until_ready(fwd_auto(x, x_mask, params))
  assert out_auto.shape == out.shape
  assert bool(jnp.allclose(out_auto, out_ref, atol=5e-2, rtol=5e-2)), \
      float(jnp.max(jnp.abs(out_auto - out_ref)))

  print("KERNEL_OK")
</pallas_src>

<mosaic_0001>
module attributes {stable_mosaic.version = 11 : i64} {
  func.func @_bilstm_chunk_kernel(%arg0: i32, %arg1: memref<16x1xi32, #tpu.memory_space<vmem>>, %arg2: memref<4x16x128xbf16, #tpu.memory_space<vmem>>, %arg3: memref<4x16x128xbf16, #tpu.memory_space<vmem>>, %arg4: memref<32x128xbf16, #tpu.memory_space<any>>, %arg5: memref<32x128xbf16, #tpu.memory_space<any>>, %arg6: memref<4x16x32xbf16, #tpu.memory_space<vmem>>, %arg7: memref<4x16x32xbf16, #tpu.memory_space<vmem>>, %arg8: memref<16x32xbf16, #tpu.memory_space<vmem>>, %arg9: memref<16x32xf32, #tpu.memory_space<vmem>>, %arg10: memref<16x32xbf16, #tpu.memory_space<vmem>>, %arg11: memref<16x32xf32, #tpu.memory_space<vmem>>, %arg12: memref<32x128xbf16, #tpu.memory_space<vmem>>, %arg13: memref<32x128xbf16, #tpu.memory_space<vmem>>, %arg14: memref<2x!tpu.dma_semaphore, #tpu.memory_space<semaphore_mem>>) attributes {dimension_semantics = [#tpu.dimension_semantics<arbitrary>], iteration_bounds = array<i64: 2>, scalar_prefetch = 0 : i64, scratch_operands = 7 : i64, tpu.core_type = #tpu.core_type<tc>, window_params = [{pipeline_mode = #tpu.pipeline_mode<synchronous>, transform_indices = @transform_0, window_bounds = array<i64: 16, 1>}, {transform_indices = @transform_1, window_bounds = array<i64: 4, 16, 128>}, {transform_indices = @transform_2, window_bounds = array<i64: 4, 16, 128>}, {}, {}, {transform_indices = @transform_5, window_bounds = array<i64: 4, 16, 32>}, {transform_indices = @transform_6, window_bounds = array<i64: 4, 16, 32>}]} {
    %c0_i32 = arith.constant 0 : i32
    %0 = arith.cmpi eq, %arg0, %c0_i32 : i32
    %1 = arith.extui %0 : i1 to i32
    %c0_i32_0 = arith.constant 0 : i32
    %2 = arith.cmpi ne, %1, %c0_i32_0 : i32
    scf.if %2 {
      %c0_i32_157 = arith.constant 0 : i32
      %470 = tpu.memref_slice %arg14[%c0_i32_157] : memref<2x!tpu.dma_semaphore, #tpu.memory_space<semaphore_mem>> -> memref<1x!tpu.dma_semaphore, #tpu.memory_space<semaphore_mem>>
      %471 = tpu.memref_squeeze %470 : memref<1x!tpu.dma_semaphore, #tpu.memory_space<semaphore_mem>> -> memref<!tpu.dma_semaphore, #tpu.memory_space<semaphore_mem>>
      tpu.enqueue_dma source(%arg4 : memref<32x128xbf16, #tpu.memory_space<any>>) target(%arg12 : memref<32x128xbf16, #tpu.memory_space<vmem>>) target_semaphore(%471 : memref<!tpu.dma_semaphore, #tpu.memory_space<semaphore_mem>>)
      %c1_i32_158 = arith.constant 1 : i32
      %472 = tpu.memref_slice %arg14[%c1_i32_158] : memref<2x!tpu.dma_semaphore, #tpu.memory_space<semaphore_mem>> -> memref<1x!tpu.dma_semaphore, #tpu.memory_space<semaphore_mem>>
      %473 = tpu.memref_squeeze %472 : memref<1x!tpu.dma_semaphore, #tpu.memory_space<semaphore_mem>> -> memref<!tpu.dma_semaphore, #tpu.memory_space<semaphore_mem>>
      tpu.enqueue_dma source(%arg5 : memref<32x128xbf16, #tpu.memory_space<any>>) target(%arg13 : memref<32x128xbf16, #tpu.memory_space<vmem>>) target_semaphore(%473 : memref<!tpu.dma_semaphore, #tpu.memory_space<semaphore_mem>>)
      %cst_159 = arith.constant 0.000000e+00 : bf16
      %474 = vector.broadcast %cst_159 : bf16 to vector<16x32xbf16>
      %c0_160 = arith.constant 0 : index
      %c0_161 = arith.constant 0 : index
      %475 = vector.load %arg8[%c0_160, %c0_161] : memref<16x32xbf16, #tpu.memory_space<vmem>>, vector<16x32xbf16>
      tpu.vector_store %arg8[%c0_160, %c0_161], %474 {strides = array<i32>} : memref<16x32xbf16, #tpu.memory_space<vmem>>, vector<16x32xbf16>,
      %cst_162 = arith.constant 0.000000e+00 : f32
      %476 = vector.broadcast %cst_162 : f32 to vector<16x32xf32>
      %c0_163 = arith.constant 0 : index
      %c0_164 = arith.constant 0 : index
      %477 = vector.load %arg9[%c0_163, %c0_164] : memref<16x32xf32, #tpu.memory_space<vmem>>, vector<16x32xf32>
      tpu.vector_store %arg9[%c0_163, %c0_164], %476 {strides = array<i32>} : memref<16x32xf32, #tpu.memory_space<vmem>>, vector<16x32xf32>,
      %cst_165 = arith.constant 0.000000e+00 : bf16
      %478 = vector.broadcast %cst_165 : bf16 to vector<16x32xbf16>
      %c0_166 = arith.constant 0 : index
      %c0_167 = arith.constant 0 : index
      %479 = vector.load %arg10[%c0_166, %c0_167] : memref<16x32xbf16, #tpu.memory_space<vmem>>, vector<16x32xbf16>
      tpu.vector_store %arg10[%c0_166, %c0_167], %478 {strides = array<i32>} : memref<16x32xbf16, #tpu.memory_space<vmem>>, vector<16x32xbf16>,
      %cst_168 = arith.constant 0.000000e+00 : f32
      %480 = vector.broadcast %cst_168 : f32 to vector<16x32xf32>
      %c0_169 = arith.constant 0 : index
      %c0_170 = arith.constant 0 : index
      %481 = vector.load %arg11[%c0_169, %c0_170] : memref<16x32xf32, #tpu.memory_space<vmem>>, vector<16x32xf32>
      tpu.vector_store %arg11[%c0_169, %c0_170], %480 {strides = array<i32>} : memref<16x32xf32, #tpu.memory_space<vmem>>, vector<16x32xf32>,
      %c0_i32_171 = arith.constant 0 : i32
      %482 = tpu.memref_slice %arg14[%c0_i32_171] : memref<2x!tpu.dma_semaphore, #tpu.memory_space<semaphore_mem>> -> memref<1x!tpu.dma_semaphore, #tpu.memory_space<semaphore_mem>>
      %483 = tpu.memref_squeeze %482 : memref<1x!tpu.dma_semaphore, #tpu.memory_space<semaphore_mem>> -> memref<!tpu.dma_semaphore, #tpu.memory_space<semaphore_mem>>
      tpu.wait_dma2 semaphore(%483 : memref<!tpu.dma_semaphore, #tpu.memory_space<semaphore_mem>>) src(%arg4 : memref<32x128xbf16, #tpu.memory_space<any>>) dst(%arg12 : memref<32x128xbf16, #tpu.memory_space<vmem>>)
      %c1_i32_172 = arith.constant 1 : i32
      %484 = tpu.memref_slice %arg14[%c1_i32_172] : memref<2x!tpu.dma_semaphore, #tpu.memory_space<semaphore_mem>> -> memref<1x!tpu.dma_semaphore, #tpu.memory_space<semaphore_mem>>
      %485 = tpu.memref_squeeze %484 : memref<1x!tpu.dma_semaphore, #tpu.memory_space<semaphore_mem>> -> memref<!tpu.dma_semaphore, #tpu.memory_space<semaphore_mem>>
      tpu.wait_dma2 semaphore(%485 : memref<!tpu.dma_semaphore, #tpu.memory_space<semaphore_mem>>) src(%arg5 : memref<32x128xbf16, #tpu.memory_space<any>>) dst(%arg13 : memref<32x128xbf16, #tpu.memory_space<vmem>>)
    } else {
    }
    %c0 = arith.constant 0 : index
    %c0_1 = arith.constant 0 : index
    %3 = vector.load %arg1[%c0, %c0_1] : memref<16x1xi32, #tpu.memory_space<vmem>>, vector<16x1xi32>
    %c0_2 = arith.constant 0 : index
    %c0_3 = arith.constant 0 : index
    %4 = vector.load %arg12[%c0_2, %c0_3] : memref<32x128xbf16, #tpu.memory_space<vmem>>, vector<32x128xbf16>
    %c0_4 = arith.constant 0 : index
    %c0_5 = arith.constant 0 : index
    %5 = vector.load %arg13[%c0_4, %c0_5] : memref<32x128xbf16, #tpu.memory_space<vmem>>, vector<32x128xbf16>
    %c0_6 = arith.constant 0 : index
    %c0_7 = arith.constant 0 : index
    %6 = vector.load %arg8[%c0_6, %c0_7] : memref<16x32xbf16, #tpu.memory_space<vmem>>, vector<16x32xbf16>
    %c0_8 = arith.constant 0 : index
    %c0_9 = arith.constant 0 : index
    %7 = vector.load %arg9[%c0_8, %c0_9] : memref<16x32xf32, #tpu.memory_space<vmem>>, vector<16x32xf32>
    %c0_10 = arith.constant 0 : index
    %c0_11 = arith.constant 0 : index
    %8 = vector.load %arg10[%c0_10, %c0_11] : memref<16x32xbf16, #tpu.memory_space<vmem>>, vector<16x32xbf16>
    %c0_12 = arith.constant 0 : index
    %c0_13 = arith.constant 0 : index
    %9 = vector.load %arg11[%c0_12, %c0_13] : memref<16x32xf32, #tpu.memory_space<vmem>>, vector<16x32xf32>
    %c0_i32_14 = arith.constant 0 : i32
    %c4_i32 = arith.constant 4 : i32
    %10 = arith.muli %arg0, %c4_i32 : i32
    %11 = arith.addi %10, %c0_i32_14 : i32
    %12 = vector.broadcast %11 : i32 to vector<16x1xi32>
    %13 = arith.cmpi sgt, %3, %12 : vector<16x1xi32>
    %14 = arith.index_cast %c0_i32_14 : i32 to index
    %c0_15 = arith.constant 0 : index
    %c0_16 = arith.constant 0 : index
    %15 = vector.load %arg2[%14, %c0_15, %c0_16] : memref<4x16x128xbf16, #tpu.memory_space<vmem>>, vector<1x16x128xbf16>
    %16 = vector.shape_cast %15 : vector<1x16x128xbf16> to vector<16x128xbf16>
    %cst = arith.constant dense<0.000000e+00> : vector<16x128xf32>
    %17 = tpu.matmul %6, %4, %cst {dimension_numbers = #tpu.dot_dimension_numbers<[1], [0], [0], [1], [0, 0, 1, 1], [], []>} : vector<16x32xbf16>, vector<32x128xbf16>, vector<16x128xf32> -> vector<16x128xf32>
    %18 = arith.extf %16 : vector<16x128xbf16> to vector<16x128xf32>
    %19 = arith.addf %18, %17 : vector<16x128xf32>
    %20 = vector.extract_strided_slice %19 {offsets = [0, 0], sizes = [16, 32], strides = [1, 1]} : vector<16x128xf32> to vector<16x32xf32>
    %cst_17 = arith.constant 5.000000e-01 : f32
    %21 = vector.broadcast %cst_17 : f32 to vector<16x32xf32>
    %22 = arith.mulf %21, %20 : vector<16x32xf32>
    %23 = math.tanh %22 : vector<16x32xf32>
    %cst_18 = arith.constant 5.000000e-01 : f32
    %24 = vector.broadcast %cst_18 : f32 to vector<16x32xf32>
    %25 = arith.mulf %24, %23 : vector<16x32xf32>
    %cst_19 = arith.constant 5.000000e-01 : f32
    %26 = vector.broadcast %cst_19 : f32 to vector<16x32xf32>
    %27 = arith.addf %25, %26 : vector<16x32xf32>
    %28 = vector.extract_strided_slice %19 {offsets = [0, 32], sizes = [16, 32], strides = [1, 1]} : vector<16x128xf32> to vector<16x32xf32>
    %cst_20 = arith.constant 5.000000e-01 : f32
    %29 = vector.broadcast %cst_20 : f32 to vector<16x32xf32>
    %30 = arith.mulf %29, %28 : vector<16x32xf32>
    %31 = math.tanh %30 : vector<16x32xf32>
    %cst_21 = arith.constant 5.000000e-01 : f32
    %32 = vector.broadcast %cst_21 : f32 to vector<16x32xf32>
    %33 = arith.mulf %32, %31 : vector<16x32xf32>
    %cst_22 = arith.constant 5.000000e-01 : f32
    %34 = vector.broadcast %cst_22 : f32 to vector<16x32xf32>
    %35 = arith.addf %33, %34 : vector<16x32xf32>
    %36 = vector.extract_strided_slice %19 {offsets = [0, 64], sizes = [16, 32], strides = [1, 1]} : vector<16x128xf32> to vector<16x32xf32>
    %37 = math.tanh %36 : vector<16x32xf32>
    %38 = vector.extract_strided_slice %19 {offsets = [0, 96], sizes = [16, 32], strides = [1, 1]} : vector<16x128xf32> to vector<16x32xf32>
    %cst_23 = arith.constant 5.000000e-01 : f32
    %39 = vector.broadcast %cst_23 : f32 to vector<16x32xf32>
    %40 = arith.mulf %39, %38 : vector<16x32xf32>
    %41 = math.tanh %40 : vector<16x32xf32>
    %cst_24 = arith.constant 5.000000e-01 : f32
    %42 = vector.broadcast %cst_24 : f32 to vector<16x32xf32>
    %43 = arith.mulf %42, %41 : vector<16x32xf32>
    %cst_25 = arith.constant 5.000000e-01 : f32
    %44 = vector.broadcast %cst_25 : f32 to vector<16x32xf32>
    %45 = arith.addf %43, %44 : vector<16x32xf32>
    %46 = arith.mulf %35, %7 : vector<16x32xf32>
    %47 = arith.mulf %27, %37 : vector<16x32xf32>
    %48 = arith.addf %46, %47 : vector<16x32xf32>
    %49 = math.tanh %48 : vector<16x32xf32>
    %50 = arith.mulf %45, %49 : vector<16x32xf32>
    %51 = arith.truncf %50 : vector<16x32xf32> to vector<16x32xbf16>
    %52 = vector.shape_cast %13 : vector<16x1xi1> to vector<16x1xi1>
    %53 = vector.broadcast %52 : vector<16x1xi1> to vector<16x32xi1>
    %54 = arith.select %53, %51, %6 : vector<16x32xi1>, vector<16x32xbf16>
    %55 = vector.shape_cast %13 : vector<16x1xi1> to vector<16x1xi1>
    %56 = vector.broadcast %55 : vector<16x1xi1> to vector<16x32xi1>
    %57 = arith.select %56, %48, %7 : vector<16x32xi1>, vector<16x32xf32>
    %cst_26 = arith.constant 0.000000e+00 : bf16
    %58 = vector.broadcast %cst_26 : bf16 to vector<16x32xbf16>
    %59 = vector.shape_cast %13 : vector<16x1xi1> to vector<16x1xi1>
    %60 = vector.broadcast %59 : vector<16x1xi1> to vector<16x32xi1>
    %61 = arith.select %60, %51, %58 : vector<16x32xi1>, vector<16x32xbf16>
    %62 = arith.index_cast %c0_i32_14 : i32 to index
    %c0_27 = arith.constant 0 : index
    %c0_28 = arith.constant 0 : index
    %63 = vector.load %arg6[%62, %c0_27, %c0_28] : memref<4x16x32xbf16, #tpu.memory_space<vmem>>, vector<1x16x32xbf16>
    %64 = vector.shape_cast %63 : vector<1x16x32xbf16> to vector<16x32xbf16>
    %65 = vector.shape_cast %61 : vector<16x32xbf16> to vector<1x16x32xbf16>
    tpu.vector_store %arg6[%62, %c0_27, %c0_28], %65 {strides = array<i32>} : memref<4x16x32xbf16, #tpu.memory_space<vmem>>, vector<1x16x32xbf16>,
    %c3_i32 = arith.constant 3 : i32
    %66 = arith.subi %c3_i32, %c0_i32_14 : i32
    %c4_i32_29 = arith.constant 4 : i32
    %67 = arith.muli %arg0, %c4_i32_29 : i32
    %68 = arith.addi %67, %c0_i32_14 : i32
    %c7_i32 = arith.constant 7 : i32
    %69 = arith.subi %c7_i32, %68 : i32
    %70 = vector.broadcast %69 : i32 to vector<16x1xi32>
    %71 = arith.cmpi sgt, %3, %70 : vector<16x1xi32>
    %72 = arith.index_cast %66 : i32 to index
    %c0_30 = arith.constant 0 : index
    %c0_31 = arith.constant 0 : index
    %73 = vector.load %arg3[%72, %c0_30, %c0_31] : memref<4x16x128xbf16, #tpu.memory_space<vmem>>, vector<1x16x128xbf16>
    %74 = vector.shape_cast %73 : vector<1x16x128xbf16> to vector<16x128xbf16>
    %cst_32 = arith.constant dense<0.000000e+00> : vector<16x128xf32>
    %75 = tpu.matmul %8, %5, %cst_32 {dimension_numbers = #tpu.dot_dimension_numbers<[1], [0], [0], [1], [0, 0, 1, 1], [], []>} : vector<16x32xbf16>, vector<32x128xbf16>, vector<16x128xf32> -> vector<16x128xf32>
    %76 = arith.extf %74 : vector<16x128xbf16> to vector<16x128xf32>
    %77 = arith.addf %76, %75 : vector<16x128xf32>
    %78 = vector.extract_strided_slice %77 {offsets = [0, 0], sizes = [16, 32], strides = [1, 1]} : vector<16x128xf32> to vector<16x32xf32>
    %cst_33 = arith.constant 5.000000e-01 : f32
    %79 = vector.broadcast %cst_33 : f32 to vector<16x32xf32>
    %80 = arith.mulf %79, %78 : vector<16x32xf32>
    %81 = math.tanh %80 : vector<16x32xf32>
    %cst_34 = arith.constant 5.000000e-01 : f32
    %82 = vector.broadcast %cst_34 : f32 to vector<16x32xf32>
    %83 = arith.mulf %82, %81 : vector<16x32xf32>
    %cst_35 = arith.constant 5.000000e-01 : f32
    %84 = vector.broadcast %cst_35 : f32 to vector<16x32xf32>
    %85 = arith.addf %83, %84 : vector<16x32xf32>
    %86 = vector.extract_strided_slice %77 {offsets = [0, 32], sizes = [16, 32], strides = [1, 1]} : vector<16x128xf32> to vector<16x32xf32>
    %cst_36 = arith.constant 5.000000e-01 : f32
    %87 = vector.broadcast %cst_36 : f32 to vector<16x32xf32>
    %88 = arith.mulf %87, %86 : vector<16x32xf32>
    %89 = math.tanh %88 : vector<16x32xf32>
    %cst_37 = arith.constant 5.000000e-01 : f32
    %90 = vector.broadcast %cst_37 : f32 to vector<16x32xf32>
    %91 = arith.mulf %90, %89 : vector<16x32xf32>
    %cst_38 = arith.constant 5.000000e-01 : f32
    %92 = vector.broadcast %cst_38 : f32 to vector<16x32xf32>
    %93 = arith.addf %91, %92 : vector<16x32xf32>
    %94 = vector.extract_strided_slice %77 {offsets = [0, 64], sizes = [16, 32], strides = [1, 1]} : vector<16x128xf32> to vector<16x32xf32>
    %95 = math.tanh %94 : vector<16x32xf32>
    %96 = vector.extract_strided_slice %77 {offsets = [0, 96], sizes = [16, 32], strides = [1, 1]} : vector<16x128xf32> to vector<16x32xf32>
    %cst_39 = arith.constant 5.000000e-01 : f32
    %97 = vector.broadcast %cst_39 : f32 to vector<16x32xf32>
    %98 = arith.mulf %97, %96 : vector<16x32xf32>
    %99 = math.tanh %98 : vector<16x32xf32>
    %cst_40 = arith.constant 5.000000e-01 : f32
    %100 = vector.broadcast %cst_40 : f32 to vector<16x32xf32>
    %101 = arith.mulf %100, %99 : vector<16x32xf32>
    %cst_41 = arith.constant 5.000000e-01 : f32
    %102 = vector.broadcast %cst_41 : f32 to vector<16x32xf32>
    %103 = arith.addf %101, %102 : vector<16x32xf32>
    %104 = arith.mulf %93, %9 : vector<16x32xf32>
    %105 = arith.mulf %85, %95 : vector<16x32xf32>
    %106 = arith.addf %104, %105 : vector<16x32xf32>
    %107 = math.tanh %106 : vector<16x32xf32>
    %108 = arith.mulf %103, %107 : vector<16x32xf32>
    %109 = arith.truncf %108 : vector<16x32xf32> to vector<16x32xbf16>
    %110 = vector.shape_cast %71 : vector<16x1xi1> to vector<16x1xi1>
    %111 = vector.broadcast %110 : vector<16x1xi1> to vector<16x32xi1>
    %112 = arith.select %111, %109, %8 : vector<16x32xi1>, vector<16x32xbf16>
    %113 = vector.shape_cast %71 : vector<16x1xi1> to vector<16x1xi1>
    %114 = vector.broadcast %113 : vector<16x1xi1> to vector<16x32xi1>
    %115 = arith.select %114, %106, %9 : vector<16x32xi1>, vector<16x32xf32>
    %cst_42 = arith.constant 0.000000e+00 : bf16
    %116 = vector.broadcast %cst_42 : bf16 to vector<16x32xbf16>
    %117 = vector.shape_cast %71 : vector<16x1xi1> to vector<16x1xi1>
    %118 = vector.broadcast %117 : vector<16x1xi1> to vector<16x32xi1>
    %119 = arith.select %118, %109, %116 : vector<16x32xi1>, vector<16x32xbf16>
    %120 = arith.index_cast %66 : i32 to index
    %c0_43 = arith.constant 0 : index
    %c0_44 = arith.constant 0 : index
    %121 = vector.load %arg7[%120, %c0_43, %c0_44] : memref<4x16x32xbf16, #tpu.memory_space<vmem>>, vector<1x16x32xbf16>
    %122 = vector.shape_cast %121 : vector<1x16x32xbf16> to vector<16x32xbf16>
    %123 = vector.shape_cast %119 : vector<16x32xbf16> to vector<1x16x32xbf16>
    tpu.vector_store %arg7[%120, %c0_43, %c0_44], %123 {strides = array<i32>} : memref<4x16x32xbf16, #tpu.memory_space<vmem>>, vector<1x16x32xbf16>,
    %c1_i32 = arith.constant 1 : i32
    %c4_i32_45 = arith.constant 4 : i32
    %124 = arith.muli %arg0, %c4_i32_45 : i32
    %125 = arith.addi %124, %c1_i32 : i32
    %126 = vector.broadcast %125 : i32 to vector<16x1xi32>
    %127 = arith.cmpi sgt, %3, %126 : vector<16x1xi32>
    %128 = arith.index_cast %c1_i32 : i32 to index
    %c0_46 = arith.constant 0 : index
    %c0_47 = arith.constant 0 : index
    %129 = vector.load %arg2[%128, %c0_46, %c0_47] : memref<4x16x128xbf16, #tpu.memory_space<vmem>>, vector<1x16x128xbf16>
    %130 = vector.shape_cast %129 : vector<1x16x128xbf16> to vector<16x128xbf16>
    %cst_48 = arith.constant dense<0.000000e+00> : vector<16x128xf32>
    %131 = tpu.matmul %54, %4, %cst_48 {dimension_numbers = #tpu.dot_dimension_numbers<[1], [0], [0], [1], [0, 0, 1, 1], [], []>} : vector<16x32xbf16>, vector<32x128xbf16>, vector<16x128xf32> -> vector<16x128xf32>
    %132 = arith.extf %130 : vector<16x128xbf16> to vector<16x128xf32>
    %133 = arith.addf %132, %131 : vector<16x128xf32>
    %134 = vector.extract_strided_slice %133 {offsets = [0, 0], sizes = [16, 32], strides = [1, 1]} : vector<16x128xf32> to vector<16x32xf32>
    %cst_49 = arith.constant 5.000000e-01 : f32
    %135 = vector.broadcast %cst_49 : f32 to vector<16x32xf32>
    %136 = arith.mulf %135, %134 : vector<16x32xf32>
    %137 = math.tanh %136 : vector<16x32xf32>
    %cst_50 = arith.constant 5.000000e-01 : f32
    %138 = vector.broadcast %cst_50 : f32 to vector<16x32xf32>
    %139 = arith.mulf %138, %137 : vector<16x32xf32>
    %cst_51 = arith.constant 5.000000e-01 : f32
    %140 = vector.broadcast %cst_51 : f32 to vector<16x32xf32>
    %141 = arith.addf %139, %140 : vector<16x32xf32>
    %142 = vector.extract_strided_slice %133 {offsets = [0, 32], sizes = [16, 32], strides = [1, 1]} : vector<16x128xf32> to vector<16x32xf32>
    %cst_52 = arith.constant 5.000000e-01 : f32
    %143 = vector.broadcast %cst_52 : f32 to vector<16x32xf32>
    %144 = arith.mulf %143, %142 : vector<16x32xf32>
    %145 = math.tanh %144 : vector<16x32xf32>
    %cst_53 = arith.constant 5.000000e-01 : f32
    %146 = vector.broadcast %cst_53 : f32 to vector<16x32xf32>
    %147 = arith.mulf %146, %145 : vector<16x32xf32>
    %cst_54 = arith.constant 5.000000e-01 : f32
    %148 = vector.broadcast %cst_54 : f32 to vector<16x32xf32>
    %149 = arith.addf %147, %148 : vector<16x32xf32>
    %150 = vector.extract_strided_slice %133 {offsets = [0, 64], sizes = [16, 32], strides = [1, 1]} : vector<16x128xf32> to vector<16x32xf32>
    %151 = math.tanh %150 : vector<16x32xf32>
    %152 = vector.extract_strided_slice %133 {offsets = [0, 96], sizes = [16, 32], strides = [1, 1]} : vector<16x128xf32> to vector<16x32xf32>
    %cst_55 = arith.constant 5.000000e-01 : f32
    %153 = vector.broadcast %cst_55 : f32 to vector<16x32xf32>
    %154 = arith.mulf %153, %152 : vector<16x32xf32>
    %155 = math.tanh %154 : vector<16x32xf32>
    %cst_56 = arith.constant 5.000000e-01 : f32
    %156 = vector.broadcast %cst_56 : f32 to vector<16x32xf32>
    %157 = arith.mulf %156, %155 : vector<16x32xf32>
    %cst_57 = arith.constant 5.000000e-01 : f32
    %158 = vector.broadcast %cst_57 : f32 to vector<16x32xf32>
    %159 = arith.addf %157, %158 : vector<16x32xf32>
    %160 = arith.mulf %149, %57 : vector<16x32xf32>
    %161 = arith.mulf %141, %151 : vector<16x32xf32>
    %162 = arith.addf %160, %161 : vector<16x32xf32>
    %163 = math.tanh %162 : vector<16x32xf32>
    %164 = arith.mulf %159, %163 : vector<16x32xf32>
    %165 = arith.truncf %164 : vector<16x32xf32> to vector<16x32xbf16>
    %166 = vector.shape_cast %127 : vector<16x1xi1> to vector<16x1xi1>
    %167 = vector.broadcast %166 : vector<16x1xi1> to vector<16x32xi1>
    %168 = arith.select %167, %165, %54 : vector<16x32xi1>, vector<16x32xbf16>
    %169 = vector.shape_cast %127 : vector<16x1xi1> to vector<16x1xi1>
    %170 = vector.broadcast %169 : vector<16x1xi1> to vector<16x32xi1>
    %171 = arith.select %170, %162, %57 : vector<16x32xi1>, vector<16x32xf32>
    %cst_58 = arith.constant 0.000000e+00 : bf16
    %172 = vector.broadcast %cst_58 : bf16 to vector<16x32xbf16>
    %173 = vector.shape_cast %127 : vector<16x1xi1> to vector<16x1xi1>
    %174 = vector.broadcast %173 : vector<16x1xi1> to vector<16x32xi1>
    %175 = arith.select %174, %165, %172 : vector<16x32xi1>, vector<16x32xbf16>
    %176 = arith.index_cast %c1_i32 : i32 to index
    %c0_59 = arith.constant 0 : index
    %c0_60 = arith.constant 0 : index
    %177 = vector.load %arg6[%176, %c0_59, %c0_60] : memref<4x16x32xbf16, #tpu.memory_space<vmem>>, vector<1x16x32xbf16>
    %178 = vector.shape_cast %177 : vector<1x16x32xbf16> to vector<16x32xbf16>
    %179 = vector.shape_cast %175 : vector<16x32xbf16> to vector<1x16x32xbf16>
    tpu.vector_store %arg6[%176, %c0_59, %c0_60], %179 {strides = array<i32>} : memref<4x16x32xbf16, #tpu.memory_space<vmem>>, vector<1x16x32xbf16>,
    %c3_i32_61 = arith.constant 3 : i32
    %180 = arith.subi %c3_i32_61, %c1_i32 : i32
    %c4_i32_62 = arith.constant 4 : i32
    %181 = arith.muli %arg0, %c4_i32_62 : i32
    %182 = arith.addi %181, %c1_i32 : i32
    %c7_i32_63 = arith.constant 7 : i32
    %183 = arith.subi %c7_i32_63, %182 : i32
    %184 = vector.broadcast %183 : i32 to vector<16x1xi32>
    %185 = arith.cmpi sgt, %3, %184 : vector<16x1xi32>
    %186 = arith.index_cast %180 : i32 to index
    %c0_64 = arith.constant 0 : index
    %c0_65 = arith.constant 0 : index
    %187 = vector.load %arg3[%186, %c0_64, %c0_65] : memref<4x16x128xbf16, #tpu.memory_space<vmem>>, vector<1x16x128xbf16>
    %188 = vector.shape_cast %187 : vector<1x16x128xbf16> to vector<16x128xbf16>
    %cst_66 = arith.constant dense<0.000000e+00> : vector<16x128xf32>
    %189 = tpu.matmul %112, %5, %cst_66 {dimension_numbers = #tpu.dot_dimension_numbers<[1], [0], [0], [1], [0, 0, 1, 1], [], []>} : vector<16x32xbf16>, vector<32x128xbf16>, vector<16x128xf32> -> vector<16x128xf32>
    %190 = arith.extf %188 : vector<16x128xbf16> to vector<16x128xf32>
    %191 = arith.addf %190, %189 : vector<16x128xf32>
    %192 = vector.extract_strided_slice %191 {offsets = [0, 0], sizes = [16, 32], strides = [1, 1]} : vector<16x128xf32> to vector<16x32xf32>
    %cst_67 = arith.constant 5.000000e-01 : f32
    %193 = vector.broadcast %cst_67 : f32 to vector<16x32xf32>
    %194 = arith.mulf %193, %192 : vector<16x32xf32>
    %195 = math.tanh %194 : vector<16x32xf32>
    %cst_68 = arith.constant 5.000000e-01 : f32
    %196 = vector.broadcast %cst_68 : f32 to vector<16x32xf32>
    %197 = arith.mulf %196, %195 : vector<16x32xf32>
    %cst_69 = arith.constant 5.000000e-01 : f32
    %198 = vector.broadcast %cst_69 : f32 to vector<16x32xf32>
    %199 = arith.addf %197, %198 : vector<16x32xf32>
    %200 = vector.extract_strided_slice %191 {offsets = [0, 32], sizes = [16, 32], strides = [1, 1]} : vector<16x128xf32> to vector<16x32xf32>
    %cst_70 = arith.constant 5.000000e-01 : f32
    %201 = vector.broadcast %cst_70 : f32 to vector<16x32xf32>
    %202 = arith.mulf %201, %200 : vector<16x32xf32>
    %203 = math.tanh %202 : vector<16x32xf32>
    %cst_71 = arith.constant 5.000000e-01 : f32
    %204 = vector.broadcast %cst_71 : f32 to vector<16x32xf32>
    %205 = arith.mulf %204, %203 : vector<16x32xf32>
    %cst_72 = arith.constant 5.000000e-01 : f32
    %206 = vector.broadcast %cst_72 : f32 to vector<16x32xf32>
    %207 = arith.addf %205, %206 : vector<16x32xf32>
    %208 = vector.extract_strided_slice %191 {offsets = [0, 64], sizes = [16, 32], strides = [1, 1]} : vector<16x128xf32> to vector<16x32xf32>
    %209 = math.tanh %208 : vector<16x32xf32>
    %210 = vector.extract_strided_slice %191 {offsets = [0, 96], sizes = [16, 32], strides = [1, 1]} : vector<16x128xf32> to vector<16x32xf32>
    %cst_73 = arith.constant 5.000000e-01 : f32
    %211 = vector.broadcast %cst_73 : f32 to vector<16x32xf32>
    %212 = arith.mulf %211, %210 : vector<16x32xf32>
    %213 = math.tanh %212 : vector<16x32xf32>
    %cst_74 = arith.constant 5.000000e-01 : f32
    %214 = vector.broadcast %cst_74 : f32 to vector<16x32xf32>
    %215 = arith.mulf %214, %213 : vector<16x32xf32>
    %cst_75 = arith.constant 5.000000e-01 : f32
    %216 = vector.broadcast %cst_75 : f32 to vector<16x32xf32>
    %217 = arith.addf %215, %216 : vector<16x32xf32>
    %218 = arith.mulf %207, %115 : vector<16x32xf32>
    %219 = arith.mulf %199, %209 : vector<16x32xf32>
    %220 = arith.addf %218, %219 : vector<16x32xf32>
    %221 = math.tanh %220 : vector<16x32xf32>
    %222 = arith.mulf %217, %221 : vector<16x32xf32>
    %223 = arith.truncf %222 : vector<16x32xf32> to vector<16x32xbf16>
    %224 = vector.shape_cast %185 : vector<16x1xi1> to vector<16x1xi1>
    %225 = vector.broadcast %224 : vector<16x1xi1> to vector<16x32xi1>
    %226 = arith.select %225, %223, %112 : vector<16x32xi1>, vector<16x32xbf16>
    %227 = vector.shape_cast %185 : vector<16x1xi1> to vector<16x1xi1>
    %228 = vector.broadcast %227 : vector<16x1xi1> to vector<16x32xi1>
    %229 = arith.select %228, %220, %115 : vector<16x32xi1>, vector<16x32xf32>
    %cst_76 = arith.constant 0.000000e+00 : bf16
    %230 = vector.broadcast %cst_76 : bf16 to vector<16x32xbf16>
    %231 = vector.shape_cast %185 : vector<16x1xi1> to vector<16x1xi1>
    %232 = vector.broadcast %231 : vector<16x1xi1> to vector<16x32xi1>
    %233 = arith.select %232, %223, %230 : vector<16x32xi1>, vector<16x32xbf16>
    %234 = arith.index_cast %180 : i32 to index
    %c0_77 = arith.constant 0 : index
    %c0_78 = arith.constant 0 : index
    %235 = vector.load %arg7[%234, %c0_77, %c0_78] : memref<4x16x32xbf16, #tpu.memory_space<vmem>>, vector<1x16x32xbf16>
    %236 = vector.shape_cast %235 : vector<1x16x32xbf16> to vector<16x32xbf16>
    %237 = vector.shape_cast %233 : vector<16x32xbf16> to vector<1x16x32xbf16>
    tpu.vector_store %arg7[%234, %c0_77, %c0_78], %237 {strides = array<i32>} : memref<4x16x32xbf16, #tpu.memory_space<vmem>>, vector<1x16x32xbf16>,
    %c2_i32 = arith.constant 2 : i32
    %c4_i32_79 = arith.constant 4 : i32
    %238 = arith.muli %arg0, %c4_i32_79 : i32
    %239 = arith.addi %238, %c2_i32 : i32
    %240 = vector.broadcast %239 : i32 to vector<16x1xi32>
    %241 = arith.cmpi sgt, %3, %240 : vector<16x1xi32>
    %242 = arith.index_cast %c2_i32 : i32 to index
    %c0_80 = arith.constant 0 : index
    %c0_81 = arith.constant 0 : index
    %243 = vector.load %arg2[%242, %c0_80, %c0_81] : memref<4x16x128xbf16, #tpu.memory_space<vmem>>, vector<1x16x128xbf16>
    %244 = vector.shape_cast %243 : vector<1x16x128xbf16> to vector<16x128xbf16>
    %cst_82 = arith.constant dense<0.000000e+00> : vector<16x128xf32>
    %245 = tpu.matmul %168, %4, %cst_82 {dimension_numbers = #tpu.dot_dimension_numbers<[1], [0], [0], [1], [0, 0, 1, 1], [], []>} : vector<16x32xbf16>, vector<32x128xbf16>, vector<16x128xf32> -> vector<16x128xf32>
    %246 = arith.extf %244 : vector<16x128xbf16> to vector<16x128xf32>
    %247 = arith.addf %246, %245 : vector<16x128xf32>
    %248 = vector.extract_strided_slice %247 {offsets = [0, 0], sizes = [16, 32], strides = [1, 1]} : vector<16x128xf32> to vector<16x32xf32>
    %cst_83 = arith.constant 5.000000e-01 : f32
    %249 = vector.broadcast %cst_83 : f32 to vector<16x32xf32>
    %250 = arith.mulf %249, %248 : vector<16x32xf32>
    %251 = math.tanh %250 : vector<16x32xf32>
    %cst_84 = arith.constant 5.000000e-01 : f32
    %252 = vector.broadcast %cst_84 : f32 to vector<16x32xf32>
    %253 = arith.mulf %252, %251 : vector<16x32xf32>
    %cst_85 = arith.constant 5.000000e-01 : f32
    %254 = vector.broadcast %cst_85 : f32 to vector<16x32xf32>
    %255 = arith.addf %253, %254 : vector<16x32xf32>
    %256 = vector.extract_strided_slice %247 {offsets = [0, 32], sizes = [16, 32], strides = [1, 1]} : vector<16x128xf32> to vector<16x32xf32>
    %cst_86 = arith.constant 5.000000e-01 : f32
    %257 = vector.broadcast %cst_86 : f32 to vector<16x32xf32>
    %258 = arith.mulf %257, %256 : vector<16x32xf32>
    %259 = math.tanh %258 : vector<16x32xf32>
    %cst_87 = arith.constant 5.000000e-01 : f32
    %260 = vector.broadcast %cst_87 : f32 to vector<16x32xf32>
    %261 = arith.mulf %260, %259 : vector<16x32xf32>
    %cst_88 = arith.constant 5.000000e-01 : f32
    %262 = vector.broadcast %cst_88 : f32 to vector<16x32xf32>
    %263 = arith.addf %261, %262 : vector<16x32xf32>
    %264 = vector.extract_strided_slice %247 {offsets = [0, 64], sizes = [16, 32], strides = [1, 1]} : vector<16x128xf32> to vector<16x32xf32>
    %265 = math.tanh %264 : vector<16x32xf32>
    %266 = vector.extract_strided_slice %247 {offsets = [0, 96], sizes = [16, 32], strides = [1, 1]} : vector<16x128xf32> to vector<16x32xf32>
    %cst_89 = arith.constant 5.000000e-01 : f32
    %267 = vector.broadcast %cst_89 : f32 to vector<16x32xf32>
    %268 = arith.mulf %267, %266 : vector<16x32xf32>
    %269 = math.tanh %268 : vector<16x32xf32>
    %cst_90 = arith.constant 5.000000e-01 : f32
    %270 = vector.broadcast %cst_90 : f32 to vector<16x32xf32>
    %271 = arith.mulf %270, %269 : vector<16x32xf32>
    %cst_91 = arith.constant 5.000000e-01 : f32
    %272 = vector.broadcast %cst_91 : f32 to vector<16x32xf32>
    %273 = arith.addf %271, %272 : vector<16x32xf32>
    %274 = arith.mulf %263, %171 : vector<16x32xf32>
    %275 = arith.mulf %255, %265 : vector<16x32xf32>
    %276 = arith.addf %274, %275 : vector<16x32xf32>
    %277 = math.tanh %276 : vector<16x32xf32>
    %278 = arith.mulf %273, %277 : vector<16x32xf32>
    %279 = arith.truncf %278 : vector<16x32xf32> to vector<16x32xbf16>
    %280 = vector.shape_cast %241 : vector<16x1xi1> to vector<16x1xi1>
    %281 = vector.broadcast %280 : vector<16x1xi1> to vector<16x32xi1>
    %282 = arith.select %281, %279, %168 : vector<16x32xi1>, vector<16x32xbf16>
    %283 = vector.shape_cast %241 : vector<16x1xi1> to vector<16x1xi1>
    %284 = vector.broadcast %283 : vector<16x1xi1> to vector<16x32xi1>
    %285 = arith.select %284, %276, %171 : vector<16x32xi1>, vector<16x32xf32>
    %cst_92 = arith.constant 0.000000e+00 : bf16
    %286 = vector.broadcast %cst_92 : bf16 to vector<16x32xbf16>
    %287 = vector.shape_cast %241 : vector<16x1xi1> to vector<16x1xi1>
    %288 = vector.broadcast %287 : vector<16x1xi1> to vector<16x32xi1>
    %289 = arith.select %288, %279, %286 : vector<16x32xi1>, vector<16x32xbf16>
    %290 = arith.index_cast %c2_i32 : i32 to index
    %c0_93 = arith.constant 0 : index
    %c0_94 = arith.constant 0 : index
    %291 = vector.load %arg6[%290, %c0_93, %c0_94] : memref<4x16x32xbf16, #tpu.memory_space<vmem>>, vector<1x16x32xbf16>
    %292 = vector.shape_cast %291 : vector<1x16x32xbf16> to vector<16x32xbf16>
    %293 = vector.shape_cast %289 : vector<16x32xbf16> to vector<1x16x32xbf16>
    tpu.vector_store %arg6[%290, %c0_93, %c0_94], %293 {strides = array<i32>} : memref<4x16x32xbf16, #tpu.memory_space<vmem>>, vector<1x16x32xbf16>,
    %c3_i32_95 = arith.constant 3 : i32
    %294 = arith.subi %c3_i32_95, %c2_i32 : i32
    %c4_i32_96 = arith.constant 4 : i32
    %295 = arith.muli %arg0, %c4_i32_96 : i32
    %296 = arith.addi %295, %c2_i32 : i32
    %c7_i32_97 = arith.constant 7 : i32
    %297 = arith.subi %c7_i32_97, %296 : i32
    %298 = vector.broadcast %297 : i32 to vector<16x1xi32>
    %299 = arith.cmpi sgt, %3, %298 : vector<16x1xi32>
    %300 = arith.index_cast %294 : i32 to index
    %c0_98 = arith.constant 0 : index
    %c0_99 = arith.constant 0 : index
    %301 = vector.load %arg3[%300, %c0_98, %c0_99] : memref<4x16x128xbf16, #tpu.memory_space<vmem>>, vector<1x16x128xbf16>
    %302 = vector.shape_cast %301 : vector<1x16x128xbf16> to vector<16x128xbf16>
    %cst_100 = arith.constant dense<0.000000e+00> : vector<16x128xf32>
    %303 = tpu.matmul %226, %5, %cst_100 {dimension_numbers = #tpu.dot_dimension_numbers<[1], [0], [0], [1], [0, 0, 1, 1], [], []>} : vector<16x32xbf16>, vector<32x128xbf16>, vector<16x128xf32> -> vector<16x128xf32>
    %304 = arith.extf %302 : vector<16x128xbf16> to vector<16x128xf32>
    %305 = arith.addf %304, %303 : vector<16x128xf32>
    %306 = vector.extract_strided_slice %305 {offsets = [0, 0], sizes = [16, 32], strides = [1, 1]} : vector<16x128xf32> to vector<16x32xf32>
    %cst_101 = arith.constant 5.000000e-01 : f32
    %307 = vector.broadcast %cst_101 : f32 to vector<16x32xf32>
    %308 = arith.mulf %307, %306 : vector<16x32xf32>
    %309 = math.tanh %308 : vector<16x32xf32>
    %cst_102 = arith.constant 5.000000e-01 : f32
    %310 = vector.broadcast %cst_102 : f32 to vector<16x32xf32>
    %311 = arith.mulf %310, %309 : vector<16x32xf32>
    %cst_103 = arith.constant 5.000000e-01 : f32
    %312 = vector.broadcast %cst_103 : f32 to vector<16x32xf32>
    %313 = arith.addf %311, %312 : vector<16x32xf32>
    %314 = vector.extract_strided_slice %305 {offsets = [0, 32], sizes = [16, 32], strides = [1, 1]} : vector<16x128xf32> to vector<16x32xf32>
    %cst_104 = arith.constant 5.000000e-01 : f32
    %315 = vector.broadcast %cst_104 : f32 to vector<16x32xf32>
    %316 = arith.mulf %315, %314 : vector<16x32xf32>
    %317 = math.tanh %316 : vector<16x32xf32>
    %cst_105 = arith.constant 5.000000e-01 : f32
    %318 = vector.broadcast %cst_105 : f32 to vector<16x32xf32>
    %319 = arith.mulf %318, %317 : vector<16x32xf32>
    %cst_106 = arith.constant 5.000000e-01 : f32
    %320 = vector.broadcast %cst_106 : f32 to vector<16x32xf32>
    %321 = arith.addf %319, %320 : vector<16x32xf32>
    %322 = vector.extract_strided_slice %305 {offsets = [0, 64], sizes = [16, 32], strides = [1, 1]} : vector<16x128xf32> to vector<16x32xf32>
    %323 = math.tanh %322 : vector<16x32xf32>
    %324 = vector.extract_strided_slice %305 {offsets = [0, 96], sizes = [16, 32], strides = [1, 1]} : vector<16x128xf32> to vector<16x32xf32>
    %cst_107 = arith.constant 5.000000e-01 : f32
    %325 = vector.broadcast %cst_107 : f32 to vector<16x32xf32>
    %326 = arith.mulf %325, %324 : vector<16x32xf32>
    %327 = math.tanh %326 : vector<16x32xf32>
    %cst_108 = arith.constant 5.000000e-01 : f32
    %328 = vector.broadcast %cst_108 : f32 to vector<16x32xf32>
    %329 = arith.mulf %328, %327 : vector<16x32xf32>
    %cst_109 = arith.constant 5.000000e-01 : f32
    %330 = vector.broadcast %cst_109 : f32 to vector<16x32xf32>
    %331 = arith.addf %329, %330 : vector<16x32xf32>
    %332 = arith.mulf %321, %229 : vector<16x32xf32>
    %333 = arith.mulf %313, %323 : vector<16x32xf32>
    %334 = arith.addf %332, %333 : vector<16x32xf32>
    %335 = math.tanh %334 : vector<16x32xf32>
    %336 = arith.mulf %331, %335 : vector<16x32xf32>
    %337 = arith.truncf %336 : vector<16x32xf32> to vector<16x32xbf16>
    %338 = vector.shape_cast %299 : vector<16x1xi1> to vector<16x1xi1>
    %339 = vector.broadcast %338 : vector<16x1xi1> to vector<16x32xi1>
    %340 = arith.select %339, %337, %226 : vector<16x32xi1>, vector<16x32xbf16>
    %341 = vector.shape_cast %299 : vector<16x1xi1> to vector<16x1xi1>
    %342 = vector.broadcast %341 : vector<16x1xi1> to vector<16x32xi1>
    %343 = arith.select %342, %334, %229 : vector<16x32xi1>, vector<16x32xf32>
    %cst_110 = arith.constant 0.000000e+00 : bf16
    %344 = vector.broadcast %cst_110 : bf16 to vector<16x32xbf16>
    %345 = vector.shape_cast %299 : vector<16x1xi1> to vector<16x1xi1>
    %346 = vector.broadcast %345 : vector<16x1xi1> to vector<16x32xi1>
    %347 = arith.select %346, %337, %344 : vector<16x32xi1>, vector<16x32xbf16>
    %348 = arith.index_cast %294 : i32 to index
    %c0_111 = arith.constant 0 : index
    %c0_112 = arith.constant 0 : index
    %349 = vector.load %arg7[%348, %c0_111, %c0_112] : memref<4x16x32xbf16, #tpu.memory_space<vmem>>, vector<1x16x32xbf16>
    %350 = vector.shape_cast %349 : vector<1x16x32xbf16> to vector<16x32xbf16>
    %351 = vector.shape_cast %347 : vector<16x32xbf16> to vector<1x16x32xbf16>
    tpu.vector_store %arg7[%348, %c0_111, %c0_112], %351 {strides = array<i32>} : memref<4x16x32xbf16, #tpu.memory_space<vmem>>, vector<1x16x32xbf16>,
    %c3_i32_113 = arith.constant 3 : i32
    %c4_i32_114 = arith.constant 4 : i32
    %352 = arith.muli %arg0, %c4_i32_114 : i32
    %353 = arith.addi %352, %c3_i32_113 : i32
    %354 = vector.broadcast %353 : i32 to vector<16x1xi32>
    %355 = arith.cmpi sgt, %3, %354 : vector<16x1xi32>
    %356 = arith.index_cast %c3_i32_113 : i32 to index
    %c0_115 = arith.constant 0 : index
    %c0_116 = arith.constant 0 : index
    %357 = vector.load %arg2[%356, %c0_115, %c0_116] : memref<4x16x128xbf16, #tpu.memory_space<vmem>>, vector<1x16x128xbf16>
    %358 = vector.shape_cast %357 : vector<1x16x128xbf16> to vector<16x128xbf16>
    %cst_117 = arith.constant dense<0.000000e+00> : vector<16x128xf32>
    %359 = tpu.matmul %282, %4, %cst_117 {dimension_numbers = #tpu.dot_dimension_numbers<[1], [0], [0], [1], [0, 0, 1, 1], [], []>} : vector<16x32xbf16>, vector<32x128xbf16>, vector<16x128xf32> -> vector<16x128xf32>
    %360 = arith.extf %358 : vector<16x128xbf16> to vector<16x128xf32>
    %361 = arith.addf %360, %359 : vector<16x128xf32>
    %362 = vector.extract_strided_slice %361 {offsets = [0, 0], sizes = [16, 32], strides = [1, 1]} : vector<16x128xf32> to vector<16x32xf32>
    %cst_118 = arith.constant 5.000000e-01 : f32
    %363 = vector.broadcast %cst_118 : f32 to vector<16x32xf32>
    %364 = arith.mulf %363, %362 : vector<16x32xf32>
    %365 = math.tanh %364 : vector<16x32xf32>
    %cst_119 = arith.constant 5.000000e-01 : f32
    %366 = vector.broadcast %cst_119 : f32 to vector<16x32xf32>
    %367 = arith.mulf %366, %365 : vector<16x32xf32>
    %cst_120 = arith.constant 5.000000e-01 : f32
    %368 = vector.broadcast %cst_120 : f32 to vector<16x32xf32>
    %369 = arith.addf %367, %368 : vector<16x32xf32>
    %370 = vector.extract_strided_slice %361 {offsets = [0, 32], sizes = [16, 32], strides = [1, 1]} : vector<16x128xf32> to vector<16x32xf32>
    %cst_121 = arith.constant 5.000000e-01 : f32
    %371 = vector.broadcast %cst_121 : f32 to vector<16x32xf32>
    %372 = arith.mulf %371, %370 : vector<16x32xf32>
    %373 = math.tanh %372 : vector<16x32xf32>
    %cst_122 = arith.constant 5.000000e-01 : f32
    %374 = vector.broadcast %cst_122 : f32 to vector<16x32xf32>
    %375 = arith.mulf %374, %373 : vector<16x32xf32>
    %cst_123 = arith.constant 5.000000e-01 : f32
    %376 = vector.broadcast %cst_123 : f32 to vector<16x32xf32>
    %377 = arith.addf %375, %376 : vector<16x32xf32>
    %378 = vector.extract_strided_slice %361 {offsets = [0, 64], sizes = [16, 32], strides = [1, 1]} : vector<16x128xf32> to vector<16x32xf32>
    %379 = math.tanh %378 : vector<16x32xf32>
    %380 = vector.extract_strided_slice %361 {offsets = [0, 96], sizes = [16, 32], strides = [1, 1]} : vector<16x128xf32> to vector<16x32xf32>
    %cst_124 = arith.constant 5.000000e-01 : f32
    %381 = vector.broadcast %cst_124 : f32 to vector<16x32xf32>
    %382 = arith.mulf %381, %380 : vector<16x32xf32>
    %383 = math.tanh %382 : vector<16x32xf32>
    %cst_125 = arith.constant 5.000000e-01 : f32
    %384 = vector.broadcast %cst_125 : f32 to vector<16x32xf32>
    %385 = arith.mulf %384, %383 : vector<16x32xf32>
    %cst_126 = arith.constant 5.000000e-01 : f32
    %386 = vector.broadcast %cst_126 : f32 to vector<16x32xf32>
    %387 = arith.addf %385, %386 : vector<16x32xf32>
    %388 = arith.mulf %377, %285 : vector<16x32xf32>
    %389 = arith.mulf %369, %379 : vector<16x32xf32>
    %390 = arith.addf %388, %389 : vector<16x32xf32>
    %391 = math.tanh %390 : vector<16x32xf32>
    %392 = arith.mulf %387, %391 : vector<16x32xf32>
    %393 = arith.truncf %392 : vector<16x32xf32> to vector<16x32xbf16>
    %394 = vector.shape_cast %355 : vector<16x1xi1> to vector<16x1xi1>
    %395 = vector.broadcast %394 : vector<16x1xi1> to vector<16x32xi1>
    %396 = arith.select %395, %393, %282 : vector<16x32xi1>, vector<16x32xbf16>
    %397 = vector.shape_cast %355 : vector<16x1xi1> to vector<16x1xi1>
    %398 = vector.broadcast %397 : vector<16x1xi1> to vector<16x32xi1>
    %399 = arith.select %398, %390, %285 : vector<16x32xi1>, vector<16x32xf32>
    %cst_127 = arith.constant 0.000000e+00 : bf16
    %400 = vector.broadcast %cst_127 : bf16 to vector<16x32xbf16>
    %401 = vector.shape_cast %355 : vector<16x1xi1> to vector<16x1xi1>
    %402 = vector.broadcast %401 : vector<16x1xi1> to vector<16x32xi1>
    %403 = arith.select %402, %393, %400 : vector<16x32xi1>, vector<16x32xbf16>
    %404 = arith.index_cast %c3_i32_113 : i32 to index
    %c0_128 = arith.constant 0 : index
    %c0_129 = arith.constant 0 : index
    %405 = vector.load %arg6[%404, %c0_128, %c0_129] : memref<4x16x32xbf16, #tpu.memory_space<vmem>>, vector<1x16x32xbf16>
    %406 = vector.shape_cast %405 : vector<1x16x32xbf16> to vector<16x32xbf16>
    %407 = vector.shape_cast %403 : vector<16x32xbf16> to vector<1x16x32xbf16>
    tpu.vector_store %arg6[%404, %c0_128, %c0_129], %407 {strides = array<i32>} : memref<4x16x32xbf16, #tpu.memory_space<vmem>>, vector<1x16x32xbf16>,
    %c3_i32_130 = arith.constant 3 : i32
    %408 = arith.subi %c3_i32_130, %c3_i32_113 : i32
    %c4_i32_131 = arith.constant 4 : i32
    %409 = arith.muli %arg0, %c4_i32_131 : i32
    %410 = arith.addi %409, %c3_i32_113 : i32
    %c7_i32_132 = arith.constant 7 : i32
    %411 = arith.subi %c7_i32_132, %410 : i32
    %412 = vector.broadcast %411 : i32 to vector<16x1xi32>
    %413 = arith.cmpi sgt, %3, %412 : vector<16x1xi32>
    %414 = arith.index_cast %408 : i32 to index
    %c0_133 = arith.constant 0 : index
    %c0_134 = arith.constant 0 : index
    %415 = vector.load %arg3[%414, %c0_133, %c0_134] : memref<4x16x128xbf16, #tpu.memory_space<vmem>>, vector<1x16x128xbf16>
    %416 = vector.shape_cast %415 : vector<1x16x128xbf16> to vector<16x128xbf16>
    %cst_135 = arith.constant dense<0.000000e+00> : vector<16x128xf32>
    %417 = tpu.matmul %340, %5, %cst_135 {dimension_numbers = #tpu.dot_dimension_numbers<[1], [0], [0], [1], [0, 0, 1, 1], [], []>} : vector<16x32xbf16>, vector<32x128xbf16>, vector<16x128xf32> -> vector<16x128xf32>
    %418 = arith.extf %416 : vector<16x128xbf16> to vector<16x128xf32>
    %419 = arith.addf %418, %417 : vector<16x128xf32>
    %420 = vector.extract_strided_slice %419 {offsets = [0, 0], sizes = [16, 32], strides = [1, 1]} : vector<16x128xf32> to vector<16x32xf32>
    %cst_136 = arith.constant 5.000000e-01 : f32
    %421 = vector.broadcast %cst_136 : f32 to vector<16x32xf32>
    %422 = arith.mulf %421, %420 : vector<16x32xf32>
    %423 = math.tanh %422 : vector<16x32xf32>
    %cst_137 = arith.constant 5.000000e-01 : f32
    %424 = vector.broadcast %cst_137 : f32 to vector<16x32xf32>
    %425 = arith.mulf %424, %423 : vector<16x32xf32>
    %cst_138 = arith.constant 5.000000e-01 : f32
    %426 = vector.broadcast %cst_138 : f32 to vector<16x32xf32>
    %427 = arith.addf %425, %426 : vector<16x32xf32>
    %428 = vector.extract_strided_slice %419 {offsets = [0, 32], sizes = [16, 32], strides = [1, 1]} : vector<16x128xf32> to vector<16x32xf32>
    %cst_139 = arith.constant 5.000000e-01 : f32
    %429 = vector.broadcast %cst_139 : f32 to vector<16x32xf32>
    %430 = arith.mulf %429, %428 : vector<16x32xf32>
    %431 = math.tanh %430 : vector<16x32xf32>
    %cst_140 = arith.constant 5.000000e-01 : f32
    %432 = vector.broadcast %cst_140 : f32 to vector<16x32xf32>
    %433 = arith.mulf %432, %431 : vector<16x32xf32>
    %cst_141 = arith.constant 5.000000e-01 : f32
    %434 = vector.broadcast %cst_141 : f32 to vector<16x32xf32>
    %435 = arith.addf %433, %434 : vector<16x32xf32>
    %436 = vector.extract_strided_slice %419 {offsets = [0, 64], sizes = [16, 32], strides = [1, 1]} : vector<16x128xf32> to vector<16x32xf32>
    %437 = math.tanh %436 : vector<16x32xf32>
    %438 = vector.extract_strided_slice %419 {offsets = [0, 96], sizes = [16, 32], strides = [1, 1]} : vector<16x128xf32> to vector<16x32xf32>
    %cst_142 = arith.constant 5.000000e-01 : f32
    %439 = vector.broadcast %cst_142 : f32 to vector<16x32xf32>
    %440 = arith.mulf %439, %438 : vector<16x32xf32>
    %441 = math.tanh %440 : vector<16x32xf32>
    %cst_143 = arith.constant 5.000000e-01 : f32
    %442 = vector.broadcast %cst_143 : f32 to vector<16x32xf32>
    %443 = arith.mulf %442, %441 : vector<16x32xf32>
    %cst_144 = arith.constant 5.000000e-01 : f32
    %444 = vector.broadcast %cst_144 : f32 to vector<16x32xf32>
    %445 = arith.addf %443, %444 : vector<16x32xf32>
    %446 = arith.mulf %435, %343 : vector<16x32xf32>
    %447 = arith.mulf %427, %437 : vector<16x32xf32>
    %448 = arith.addf %446, %447 : vector<16x32xf32>
    %449 = math.tanh %448 : vector<16x32xf32>
    %450 = arith.mulf %445, %449 : vector<16x32xf32>
    %451 = arith.truncf %450 : vector<16x32xf32> to vector<16x32xbf16>
    %452 = vector.shape_cast %413 : vector<16x1xi1> to vector<16x1xi1>
    %453 = vector.broadcast %452 : vector<16x1xi1> to vector<16x32xi1>
    %454 = arith.select %453, %451, %340 : vector<16x32xi1>, vector<16x32xbf16>
    %455 = vector.shape_cast %413 : vector<16x1xi1> to vector<16x1xi1>
    %456 = vector.broadcast %455 : vector<16x1xi1> to vector<16x32xi1>
    %457 = arith.select %456, %448, %343 : vector<16x32xi1>, vector<16x32xf32>
    %cst_145 = arith.constant 0.000000e+00 : bf16
    %458 = vector.broadcast %cst_145 : bf16 to vector<16x32xbf16>
    %459 = vector.shape_cast %413 : vector<16x1xi1> to vector<16x1xi1>
    %460 = vector.broadcast %459 : vector<16x1xi1> to vector<16x32xi1>
    %461 = arith.select %460, %451, %458 : vector<16x32xi1>, vector<16x32xbf16>
    %462 = arith.index_cast %408 : i32 to index
    %c0_146 = arith.constant 0 : index
    %c0_147 = arith.constant 0 : index
    %463 = vector.load %arg7[%462, %c0_146, %c0_147] : memref<4x16x32xbf16, #tpu.memory_space<vmem>>, vector<1x16x32xbf16>
    %464 = vector.shape_cast %463 : vector<1x16x32xbf16> to vector<16x32xbf16>
    %465 = vector.shape_cast %461 : vector<16x32xbf16> to vector<1x16x32xbf16>
    tpu.vector_store %arg7[%462, %c0_146, %c0_147], %465 {strides = array<i32>} : memref<4x16x32xbf16, #tpu.memory_space<vmem>>, vector<1x16x32xbf16>,
    %c4_i32_148 = arith.constant 4 : i32
    %c0_149 = arith.constant 0 : index
    %c0_150 = arith.constant 0 : index
    %466 = vector.load %arg8[%c0_149, %c0_150] : memref<16x32xbf16, #tpu.memory_space<vmem>>, vector<16x32xbf16>
    tpu.vector_store %arg8[%c0_149, %c0_150], %396 {strides = array<i32>} : memref<16x32xbf16, #tpu.memory_space<vmem>>, vector<16x32xbf16>,
    %c0_151 = arith.constant 0 : index
    %c0_152 = arith.constant 0 : index
    %467 = vector.load %arg9[%c0_151, %c0_152] : memref<16x32xf32, #tpu.memory_space<vmem>>, vector<16x32xf32>
    tpu.vector_store %arg9[%c0_151, %c0_152], %399 {strides = array<i32>} : memref<16x32xf32, #tpu.memory_space<vmem>>, vector<16x32xf32>,
    %c0_153 = arith.constant 0 : index
    %c0_154 = arith.constant 0 : index
    %468 = vector.load %arg10[%c0_153, %c0_154] : memref<16x32xbf16, #tpu.memory_space<vmem>>, vector<16x32xbf16>
    tpu.vector_store %arg10[%c0_153, %c0_154], %454 {strides = array<i32>} : memref<16x32xbf16, #tpu.memory_space<vmem>>, vector<16x32xbf16>,
    %c0_155 = arith.constant 0 : index
    %c0_156 = arith.constant 0 : index
    %469 = vector.load %arg11[%c0_155, %c0_156] : memref<16x32xf32, #tpu.memory_space<vmem>>, vector<16x32xf32>
    tpu.vector_store %arg11[%c0_155, %c0_156], %457 {strides = array<i32>} : memref<16x32xf32, #tpu.memory_space<vmem>>, vector<16x32xf32>,
    return
  }
  func.func @transform_0(%arg0: i32) -> (i32, i32) {
    %c0_i32 = arith.constant 0 : i32
    %c0_i32_0 = arith.constant 0 : i32
    %c0_i32_1 = arith.constant 0 : i32
    return %c0_i32, %c0_i32_0 : i32, i32
  }
  func.func @transform_1(%arg0: i32) -> (i32, i32, i32) {
    %c0_i32 = arith.constant 0 : i32
    %c0_i32_0 = arith.constant 0 : i32
    %c0_i32_1 = arith.constant 0 : i32
    return %arg0, %c0_i32, %c0_i32_0 : i32, i32, i32
  }
  func.func @transform_2(%arg0: i32) -> (i32, i32, i32) {
    %c1_i32 = arith.constant 1 : i32
    %0 = arith.subi %c1_i32, %arg0 : i32
    %c0_i32 = arith.constant 0 : i32
    %c0_i32_0 = arith.constant 0 : i32
    %c0_i32_1 = arith.constant 0 : i32
    return %0, %c0_i32, %c0_i32_0 : i32, i32, i32
  }
  func.func @transform_5(%arg0: i32) -> (i32, i32, i32) {
    %c0_i32 = arith.constant 0 : i32
    %c0_i32_0 = arith.constant 0 : i32
    %c0_i32_1 = arith.constant 0 : i32
    return %arg0, %c0_i32, %c0_i32_0 : i32, i32, i32
  }
  func.func @transform_6(%arg0: i32) -> (i32, i32, i32) {
    %c1_i32 = arith.constant 1 : i32
    %0 = arith.subi %c1_i32, %arg0 : i32
    %c0_i32 = arith.constant 0 : i32
    %c0_i32_0 = arith.constant 0 : i32
    %c0_i32_1 = arith.constant 0 : i32
    return %0, %c0_i32, %c0_i32_0 : i32, i32, i32
  }
}

</mosaic_0001>

<bundles_post_ra>
// kernel: bidirectional_rnn_forward.2
= control target key start
LH: loop header
LB: loop body
LE: loop exit
PB: predicated region body
PF: predicated region fallthrough
CT: control target
= control target key end

     0   :  { %s1731_s21 = smov 0   ;;  %s2431_s0 = inlined_call_operand.vmem [shape: s32[16,1], index: 0, kind: input, shape index: {}]   ;;  %s2432_s1 = inlined_call_operand.vmem [shape: bf16[8,16,128], index: 1, kind: input, shape index: {}]   ;;  %s2433_s2 = inlined_call_operand.vmem [shape: bf16[8,16,128], index: 2, kind: input, shape index: {}]   ;;  %s2434_s3 = inlined_call_operand.vmem [shape: bf16[32,128], index: 3, kind: input, shape index: {}]   ;;  %s2435_s4 = inlined_call_operand.vmem [shape: bf16[32,128], index: 4, kind: input, shape index: {}]   ;;  %s2436_s5 = inlined_call_operand.vmem [shape: bf16[8,16,32], index: 5, kind: output, shape index: {0}]   ;;  %s2437_s6 = inlined_call_operand.vmem [shape: bf16[8,16,32], index: 6, kind: output, shape index: {1}]  }
   0x1 LB: > { %s1437_s22 = sadd.s32 4294967295, %s1688_s21   ;;  %p1441_p0 = scmp.ge.s32.totalorder %s1688_s21, 1  ;;  %s1688_s21 = sphi %s1731_s21, %s17_s21  }
   0x2   : > { %p187_p1 = scmp.lt.s32.totalorder %s1688_s21, 3 }
   0x4   : > { %p188_p2 = pnand %p1441_p0, %p187_p1 }
   0x5   : > { %s1739_s23 = sshll.u32 (!%p188_p2), %s1437_s22, 2  ;;  %s236_s24 = ssub.s32 (!%p188_p2), 1, %s1437_s22 }
   0x6   : > { %191 = sbr.rel (%p188_p2) target bundleno = 2507 (0x9cb), region = 32  ;;  %p230_p3 = scmp.lt.s32.totalorder (!%p188_p2), %s1739_s23, 7 }
   0x7   : > { %s1445_s25 = sshll.u32 (!%p188_p2), %s236_s24, 2  ;;  %p1454_p5 = scmp.ne.s32.totalorder (!%p188_p2), %s1437_s22, 0 }
   0x8   : > { %p238_p4 = scmp.lt.s32.totalorder (!%p188_p2), %s1445_s25, 7 }
   0xb   : > { %s231_s26 = scalar_select %p230_p3, %s1739_s23, 7 }
   0xc   : > { %s2475_s25 = smov (!%p238_p4, %s1445_s25), 7  ;;  %265 = sbr.rel (%p1454_p5) target bundleno = 36 (0x24), region = 36 }
   0xd   : > { %s1516_s27 = sshll.u32 %s231_s26, 3  ;;  %s1517_s7 = sshll.u32 %s2475_s25, 3 }
   0xe   : > { %s1746_s30 = scalar_lea.vmem %s2432_s1, %s1516_s27  ;;  %s1751_s10 = scalar_lea.vmem %s2433_s2, %s1517_s7 }
   0xf   : > { %s1756_s13 = scalar_lea.vmem %s2436_s5, %s1516_s27  ;;  %s1761_s16 = scalar_lea.vmem %s2437_s6, %s1517_s7 }
  0x11   : > { %v276_v0 = vld [vmem:[%s2434_s3] sm:$0xff]  ;;  %v278_v1 = vld [vmem:[%s2434_s3 + $0x8] sm:$0xff] }
  0x12   : > { %277 = vst [vmem:[#allocation6] sm:$0xff] %v276_v0 }
  0x13   : > { %279 = vst [vmem:[#allocation6 + $0x8] sm:$0xff] %v278_v1 }
  0x14   : > { %285 = vsyncadd [#allocation8], 256  ;;  %v297_v2 = vld [vmem:[%s2435_s4] sm:$0xff]  ;;  %v299_v3 = vld [vmem:[%s2435_s4 + $0x8] sm:$0xff] }
  0x15   : > { %298 = vst [vmem:[#allocation7 + $0x8] sm:$0xff] %v297_v2 }
  0x16   : > { %300 = vst [vmem:[#allocation7] sm:$0xff] %v299_v3 }
  0x17   : > { %306 = vsyncadd [#allocation8 + $0x1], 256  ;;  %vm307_vm0 = vcmask 257024   ;;  %v1690_v4 = vmov 0   ;;  %vm310_vm1 = vcmask 261120   ;;  %v1691_v5 = vmov 0.0  }
  0x18   : > { %308 = vst.msk [vmem:[#allocation2] sm:$0xf] %vm307_vm0, %v1690_v4 }
  0x19   : > { %309 = vst.msk [vmem:[#allocation2 + $0x4] sm:$0xf] %vm307_vm0, %v1690_v4 }
  0x1a   : > { %313 = vst.msk [vmem:[#allocation4] sm:$0xf] %vm307_vm0, %v1690_v4 }
  0x1b   : > { %314 = vst.msk [vmem:[#allocation4 + $0x4] sm:$0xf] %vm307_vm0, %v1690_v4 }
  0x1c   : > { %311 = vst.msk [vmem:[#allocation3] sm:$0xff] %vm310_vm1, %v1691_v5 }
  0x1d   : > { %312 = vst.msk [vmem:[#allocation3 + $0x8] sm:$0xff] %vm310_vm1, %v1691_v5 }
  0x1e   : > { %315 = vst.msk [vmem:[#allocation5] sm:$0xff] %vm310_vm1, %v1691_v5 }
  0x1f   : > { %316 = vst.msk [vmem:[#allocation5 + $0x8] sm:$0xff] %vm310_vm1, %v1691_v5 }
  0x20   : > { %1682 = dma.done.wait [#allocation8], 256 }
  0x21   : > { %1683 = vsyncadd [#allocation8], 4294967040 }
  0x22   : > { %1684 = dma.done.wait [#allocation8 + $0x1], 256 }
  0x23   : > { %1685 = vsyncadd [#allocation8 + $0x1], 4294967040 }
  0x24 PF: > { %v1521_v6 = vld [vmem:[#allocation6 + $0x8] sm:$0xff]  ;;  %v1523_v7 = vld [vmem:[#allocation7] sm:$0xff]  ;;  %v1520_v8 = vld [vmem:[#allocation6] sm:$0xff]  ;;  %s1692_s22 = smov 32   ;;  %vm2438_vm2 = vcmask 261120   ;;  %s1693_s28 = smov 64   ;;  %v342_v53 = vstv %s1739_s23 }
  0x25   : > { %374 = vmatpush.bf16.msra.mxu0 %v1521_v6  ;;  %508 = vmatpush.bf16.msra.mxu1 %v1523_v7  ;;  %v1522_v9 = vld [vmem:[#allocation7 + $0x8] sm:$0xff]  ;;  %v1524_v11 = vld [vmem:[#allocation2] sm:$0xff]  ;;  %v1525_v12 = vld [vmem:[#allocation4] sm:$0xff]  ;;  %v1694_v34 = vmov 0   ;;  %s475_s8 = ssub.s32 7, %s1739_s23  ;;  %s1695_s12 = smov 96  }
  0x26   : > { %v335_v10 = vld [vmem:[#allocation3] sm:$0xff]  ;;  %742 = vmatpush.bf16.msra.mxu3 %v1523_v7  ;;  %632 = vmatpush.bf16.msra.mxu2 %v1521_v6  ;;  %v336_v13 = vld [vmem:[#allocation3 + $0x8] sm:$0xff]  ;;  %v1527_v14 = vld [vmem:[%s1746_s30] sm:$0xff]   ;;  %v476_v62 = vstv %s475_s8  ;;  %s609_s14 = sadd.s32 1, %s1739_s23  ;;  %s719_s15 = ssub.s32 6, %s1739_s23 }
  0x27   : > { %398 = vrot.lane.b32.xlu2 %v335_v10, %s1692_s22  ;;  %v1558_v15 = vld [vmem:[%s1751_s10 + $0x18] sm:$0xff]   ;;  %v1528_v16 = vunpack.c.l.bf16 %v1527_v14  ;;  %v1529_v22 = vunpack.c.h.bf16 %v1527_v14  ;;  %v339_v32 = vld [vmem:[#allocation5] sm:$0xff]  ;;  %v340_v33 = vld [vmem:[#allocation5 + $0x8] sm:$0xff]  ;;  %1578 = vset.pattern.permute.xlu1 %v1694_v34  ;;  %s829_s17 = sadd.s32 2, %s1739_s23  ;;  %s939_s18 = ssub.s32 5, %s1739_s23 }
  0x28   : > { %v1532_v17 = vunpack.c.l.bf16 %v1558_v15  ;;  %v1533_v23 = vunpack.c.h.bf16 %v1558_v15  ;;  %1580 = vset.pattern.permute.xlu0 %v1694_v34  ;;  %1579 = vset.pattern.permute.xlu2 %v1694_v34  ;;  %v1800_v52 = vld [vmem:[%s2431_s0] sm:$0xff]  ;;  %v1817_v63 = vld [vmem:[%s2431_s0 + $0x8] sm:$0xff] }
  0x29   : > { %375 = vmatpush.bf16.msra.mxu0 %v1520_v8  ;;  %509 = vmatpush.bf16.msra.mxu1 %v1522_v9  ;;  %vm343_vm3 = vcmp.gt.s32.totalorder %v1800_v52, %v342_v53  ;;  %vm477_vm4 = vcmp.gt.s32.totalorder %v1800_v52, %v476_v62  ;;  %vm478_vm5 = vcmp.gt.s32.totalorder %v1817_v63, %v476_v62  ;;  %v333_v5 = vld [vmem:[#allocation2] sm:$0xf] }
  0x2a   : > { %743 = vmatpush.bf16.msra.mxu3 %v1522_v9  ;;  %633 = vmatpush.bf16.msra.mxu2 %v1520_v8  ;;  %v440_v60 = vsel %vm343_vm3, 1, %v1694_v34  ;;  %vm344_vm6 = vcmp.gt.s32.totalorder %v1817_v63, %v342_v53  ;;  %v574_v0 = vsel %vm477_vm4, 1, %v1694_v34  ;;  %v575_v1 = vsel %vm478_vm5, 1, %v1694_v34 }
  0x2b   : > { %v441_v2 = vsel %vm344_vm6, 1, %v1694_v34 }
  0x2c   : > { %1468 = vmatmul.msk.bf16.vlgmr.msra.gmra.mxu0 %vm2438_vm2, %v1524_v11  ;;  %1483 = vmatmul.msk.bf16.vlgmr.msra.gmra.mxu1 %vm2438_vm2, %v1525_v12 }
  0x2d   : > { %962 = vmatpush.bf16.msrb.mxu1 %v1523_v7  ;;  %852 = vmatpush.bf16.msrb.mxu0 %v1521_v6 }
  0x2e   : > { %1181 = vmatpush.bf16.msrb.mxu3 %v1523_v7  ;;  %1072 = vmatpush.bf16.msrb.mxu2 %v1521_v6 }
  0x2f   : > { %400 = vrot.lane.b32.xlu2 %v336_v13, %s1692_s22 }
  0x31   : > { %963 = vmatpush.bf16.msrb.mxu1 %v1522_v9  ;;  %853 = vmatpush.bf16.msrb.mxu0 %v1520_v8 }
  0x32   : > { %1182 = vmatpush.bf16.msrb.mxu3 %v1522_v9  ;;  %1073 = vmatpush.bf16.msrb.mxu2 %v1520_v8 }
  0x81   : > { %v399_v3 = vpop.permute.xlu2 %398 }
  0x89   : > { %v401_v4 = vpop.permute.xlu2 %400 }
  0xa9   : > { %v377_v18 = vpop.f32.mrf.mxu0  ;;  %v511_v19 = vpop.f32.mrf.mxu1 }
  0xaa   : > { %v384_v20 = vadd.f32 %v1528_v16, %v377_v18  ;;  %v518_v21 = vadd.f32 %v1532_v17, %v511_v19  ;;  %v338_v17 = vld [vmem:[#allocation4 + $0x4] sm:$0xf] }
  0xac   : > { %1581 = vtanh.f32 %v384_v20  ;;  %v386_v35 = vmul.f32 0.5, %v384_v20  ;;  %v520_v36 = vmul.f32 0.5, %v518_v21 }
  0xad   : > { %1583 = vtanh.f32 %v518_v21 }
  0xb1   : > { %v379_v24 = vpop.f32.mrf.mxu0  ;;  %v513_v25 = vpop.f32.mrf.mxu1 }
  0xb2   : > { %v1582_v26 = vpop.eup %1581  ;;  %v385_v27 = vadd.f32 %v1529_v22, %v379_v24  ;;  %v519_v28 = vadd.f32 %v1533_v23, %v513_v25 }
  0xb3   : > { %v1584_v29 = vpop.eup %1583  ;;  %408 = vrot.lane.b32.xlu0 %v1582_v26, %s1693_s28 }
  0xb4   : > { %1585 = vtanh.f32 %v385_v27  ;;  %542 = vrot.lane.b32.xlu1 %v1584_v29, %s1693_s28  ;;  %v387_v37 = vmul.f32 0.5, %v385_v27  ;;  %v521_v38 = vmul.f32 0.5, %v519_v28  ;;  %v337_v29 = vld [vmem:[#allocation4] sm:$0xf] }
  0xb5   : > { %1587 = vtanh.f32 %v519_v28 }
  0xb6   : > { %1589 = vtanh.f32 %v386_v35  ;;  %v334_v35 = vld [vmem:[#allocation2 + $0x4] sm:$0xf] }
  0xb7   : > { %1591 = vtanh.f32 %v520_v36 }
  0xb8   : > { %1593 = vtanh.f32 %v387_v37 }
  0xb9   : > { %1595 = vtanh.f32 %v521_v38 }
  0xba   : > { %v1586_v30 = vpop.eup %1585 }
  0xbb   : > { %v1588_v31 = vpop.eup %1587  ;;  %410 = vrot.lane.b32.xlu0 %v1586_v30, %s1693_s28 }
  0xbc   : > { %544 = vrot.lane.b32.xlu1 %v1588_v31, %s1693_s28  ;;  %v1590_v39 = vpop.eup %1589 }
  0xbd   : > { %v1592_v40 = vpop.eup %1591  ;;  %v390_v41 = vmul.f32 0.5, %v1590_v39 }
  0xbe   : > { %v524_v42 = vmul.f32 0.5, %v1592_v40  ;;  %v1594_v44 = vpop.eup %1593 }
  0xbf   : > { %v1790_v43 = vadd.f32 0.5, %v390_v41  ;;  %v1596_v47 = vpop.eup %1595  ;;  %v391_v51 = vmul.f32 0.5, %v1594_v44 }
  0xc0   : > { %v1792_v45 = vadd.f32 0.5, %v524_v42  ;;  %v525_v54 = vmul.f32 0.5, %v1596_v47 }
  0xc1   : > { %v1805_v55 = vadd.f32 0.5, %v391_v51  ;;  %v404_v6 = vmul.f32 %v399_v3, %v1790_v43 }
  0xc2   : > { %v1808_v56 = vadd.f32 0.5, %v525_v54 }
  0xc3   : > { %532 = vrot.lane.b32.xlu0 %v339_v32, %s1692_s22  ;;  %v405_v21 = vmul.f32 %v401_v4, %v1805_v55 }
  0xc4   : > { %534 = vrot.lane.b32.xlu1 %v340_v33, %s1692_s22 }
 0x125   : > { %v409_v46 = vpop.permute.xlu0 %408 }
 0x126   : > { %v543_v48 = vpop.permute.xlu1 %542  ;;  %v414_v49 = vmul.f32 %v409_v46, %v1790_v43 }
 0x127   : > { %v548_v50 = vmul.f32 %v543_v48, %v1792_v45 }
 0x128   : > { %418 = vrot.lane.b32.xlu2 %v414_v49, %s1692_s22 }
 0x129   : > { %552 = vrot.lane.b32.xlu1 %v548_v50, %s1692_s22 }
 0x12d   : > { %v411_v57 = vpop.permute.xlu0 %410 }
 0x12e   : > { %v545_v58 = vpop.permute.xlu1 %544  ;;  %v415_v59 = vmul.f32 %v411_v57, %v1805_v55 }
 0x12f   : > { %v549_v61 = vmul.f32 %v545_v58, %v1808_v56 }
 0x130   : > { %420 = vrot.lane.b32.xlu0 %v415_v59, %s1692_s22 }
 0x131   : > { %554 = vrot.lane.b32.xlu2 %v549_v61, %s1692_s22  ;;  %443 = vperm.xlu1 %1578, %v440_v60  }
 0x135   : > { %v533_v15 = vpop.permute.xlu0 %532 }
 0x136   : > { %v535_v9 = vpop.permute.xlu1 %534  ;;  %v538_v16 = vmul.f32 %v533_v15, %v1792_v45 }
 0x137   : > { %v539_v10 = vmul.f32 %v535_v9, %v1808_v56 }
 0x138   : > { %577 = vperm.xlu0 %1580, %v574_v0  }
 0x139   : > { %580 = vperm.xlu1 %1578, %v575_v1   ;;  %446 = vperm.xlu2 %1579, %v441_v2  }
 0x141   : > { %452 = vrot.lane.b32.xlu2 %v333_v5, %s1695_s12 }
 0x182   : > { %v419_v7 = vpop.permute.xlu2 %418 }
 0x183   : > { %v424_v8 = vadd.f32 %v419_v7, %v404_v6 }
 0x185   : > { %1597 = vtanh.f32 %v424_v8 }
 0x18b   : > { %v1598_v11 = vpop.eup %1597  ;;  %v555_v12 = vpop.permute.xlu2 %554 }
 0x18c   : > { %v559_v13 = vadd.f32 %v555_v12, %v539_v10  ;;  %430 = vrot.lane.b32.xlu0 %v1598_v11, %s1693_s28  ;;  %v1560_v10 = vld [vmem:[%s1751_s10 + $0x10] sm:$0xff]  }
 0x18d   : > { %v1540_v11 = vunpack.c.l.bf16 %v1560_v10 }
 0x18e   : > { %1599 = vtanh.f32 %v559_v13 }
 0x193   : > { %v447_v20 = vpop.permute.xlu2 %446 }
 0x194   : > { %v1600_v14 = vpop.eup %1599  ;;  %vm449_vm7 = vcmp.eq.s32.totalorder %v447_v20, 1 }
 0x195   : > { %566 = vrot.lane.b32.xlu0 %v1600_v14, %s1693_s28  ;;  %vm1901_vm14 = vmpackc.low %vm449_vm7, %vm449_vm7 }
 0x19b   : > { %v553_v18 = vpop.permute.xlu1 %552  ;;  %v453_v36 = vpop.permute.xlu2 %452 }
 0x19c   : > { %v558_v19 = vadd.f32 %v553_v18, %v538_v16 }
 0x19d   : > { %588 = vrot.lane.b32.xlu0 %v338_v17, %s1695_s12 }
 0x19e   : > { %1601 = vtanh.f32 %v558_v19 }
 0x1a2   : > { %v421_v22 = vpop.permute.xlu0 %420 }
 0x1a3   : > { %v425_v23 = vadd.f32 %v421_v22, %v405_v21  ;;  %v444_v24 = vpop.permute.xlu1 %443 }
 0x1a4   : > { %v1602_v25 = vpop.eup %1601  ;;  %vm448_vm8 = vcmp.eq.s32.totalorder %v444_v24, 1 }
 0x1a5   : > { %1603 = vtanh.f32 %v425_v23  ;;  %v1835_v26 = vsel %vm448_vm8, %v424_v8, %v399_v3  ;;  %v1838_v27 = vsel %vm449_vm7, %v425_v23, %v401_v4  ;;  %564 = vrot.lane.b32.xlu2 %v1602_v25, %s1693_s28  ;;  %vm1852_vm11 = vmpackc.low %vm448_vm8, %vm448_vm8 }
 0x1aa   : > { %v578_v28 = vpop.permute.xlu0 %577 }
 0x1ab   : > { %v1604_v30 = vpop.eup %1603  ;;  %vm582_vm9 = vcmp.eq.s32.totalorder %v578_v28, 1  ;;  %v581_v31 = vpop.permute.xlu1 %580 }
 0x1ac   : > { %v1841_v32 = vsel %vm582_vm9, %v558_v19, %v533_v15  ;;  %vm583_vm10 = vcmp.eq.s32.totalorder %v581_v31, 1  ;;  %432 = vrot.lane.b32.xlu1 %v1604_v30, %s1693_s28  ;;  %vm1857_vm12 = vmpackc.low %vm582_vm9, %vm582_vm9  ;;  %v1559_v15 = vld [vmem:[%s1746_s30 + $0x8] sm:$0xff]   ;;  %v1541_v19 = vunpack.c.h.bf16 %v1560_v10 }
 0x1ad   : > { %v1845_v33 = vsel %vm583_vm10, %v559_v13, %v535_v9  ;;  %586 = vrot.lane.b32.xlu2 %v337_v29, %s1695_s12  ;;  %vm1874_vm13 = vmpackc.low %vm583_vm10, %vm583_vm10  ;;  %v1536_v16 = vunpack.c.l.bf16 %v1559_v15  ;;  %v1537_v21 = vunpack.c.h.bf16 %v1559_v15 }
 0x1b4   : > { %454 = vrot.lane.b32.xlu1 %v334_v35, %s1695_s12 }
 0x1fe   : > { %v431_v37 = vpop.permute.xlu0 %430 }
 0x1ff   : > { %v565_v38 = vpop.permute.xlu2 %564  ;;  %v436_v39 = vmul.f32 %v431_v37, %v1790_v43 }
 0x200   : > { %v570_v41 = vmul.f32 %v565_v38, %v1792_v45 }
 0x201   : > { %v1861_v44 = vpack.c.bf16 %v436_v39, %v436_v39  ;;  %v610_v39 = vstv %s609_s14 }
 0x202   : > { %v1863_v46 = vpack.c.bf16 %v570_v41, %v570_v41  ;;  %vm611_vm15 = vcmp.gt.s32.totalorder %v1800_v52, %v610_v39  ;;  %vm612_vm0 = vcmp.gt.s32.totalorder %v1817_v63, %v610_v39 }
 0x203   : > { %v462_v43 = vsel %vm1852_vm11, %v1861_v44, 0  ;;  %v1911_v3 = vsel %vm1852_vm11, %v1861_v44, %v453_v36  ;;  %v690_v41 = vsel %vm611_vm15, 1, %v1694_v34 }
 0x204   : > { %v596_v47 = vsel %vm1857_vm12, %v1863_v46, 0  ;;  %v618_v6 = vunpack.c.l.b16 %v1911_v3 }
 0x207   : > { %v567_v48 = vpop.permute.xlu0 %566  ;;  %v587_v51 = vpop.permute.xlu2 %586 }
 0x208   : > { %v571_v49 = vmul.f32 %v567_v48, %v1808_v56  ;;  %v1886_v54 = vsel %vm1857_vm12, %v1863_v46, %v587_v51 }
 0x209   : > { %v728_v58 = vunpack.c.l.b16 %v1886_v54 }
 0x20a   : > { %v1878_v50 = vpack.c.bf16 %v571_v49, %v571_v49 }
 0x20c   : > { %v597_v53 = vsel %vm1874_vm13, %v1878_v50, 0 }
 0x20f   : > { %v589_v57 = vpop.permute.xlu0 %588 }
 0x210   : > { %v1891_v56 = vsel %vm1874_vm13, %v1878_v50, %v589_v57 }
 0x211   : > { %v729_v59 = vunpack.c.l.b16 %v1891_v56 }
 0x213   : > { %v730_v60 = vpack.c.b16 %v729_v59, %v728_v58 }
 0x215   : > { %731 = vrot.lane.b32.xlu2 %v730_v60, %s1692_s22 }
 0x21e   : > { %v433_v61 = vpop.permute.xlu1 %432 }
 0x21f   : > { %v437_v62 = vmul.f32 %v433_v61, %v1805_v55 }
 0x221   : > { %v1897_v0 = vpack.c.bf16 %v437_v62, %v437_v62 }
 0x223   : > { %v463_v2 = vsel %vm1901_vm14, %v1897_v0, 0 }
 0x226   : > { %v455_v4 = vpop.permute.xlu1 %454 }
 0x227   : > { %v1916_v55 = vsel %vm1901_vm14, %v1897_v0, %v455_v4 }
 0x228   : > { %v619_v5 = vunpack.c.l.b16 %v1916_v55 }
 0x22a   : > { %v620_v7 = vpack.c.b16 %v619_v5, %v618_v6 }
 0x22c   : > { %621 = vrot.lane.b32.xlu1 %v620_v7, %s1692_s22 }
 0x26f   : > { %v732_v8 = vpop.permute.xlu2 %731 }
 0x270   : > { %1493 = vmatmul.msk.bf16.vlgmr.msra.gmra.mxu3 %vm2438_vm2, %v732_v8 }
 0x29e   : > { %v622_v9 = vpop.permute.xlu1 %621 }
 0x29f   : > { %1488 = vmatmul.msk.bf16.vlgmr.msra.gmra.mxu2 %vm2438_vm2, %v622_v9 }
 0x2f3   : > { %v745_v12 = vpop.f32.mrf.mxu3 }
 0x2f4   : > { %v752_v13 = vadd.f32 %v1540_v11, %v745_v12 }
 0x2f6   : > { %1605 = vtanh.f32 %v752_v13  ;;  %v754_v30 = vmul.f32 0.5, %v752_v13 }
 0x2fb   : > { %v747_v20 = vpop.f32.mrf.mxu3 }
 0x2fc   : > { %v1606_v14 = vpop.eup %1605  ;;  %v753_v22 = vadd.f32 %v1541_v19, %v747_v20 }
 0x2fd   : > { %768 = vrot.lane.b32.xlu2 %v1606_v14, %s1693_s28 }
 0x2fe   : > { %v755_v49 = vmul.f32 0.5, %v753_v22 }
 0x322   : > { %v635_v17 = vpop.f32.mrf.mxu2 }
 0x323   : > { %v642_v18 = vadd.f32 %v1536_v16, %v635_v17  ;;  %v691_v17 = vsel %vm612_vm0, 1, %v1694_v34 }
 0x325   : > { %1607 = vtanh.f32 %v642_v18  ;;  %v644_v48 = vmul.f32 0.5, %v642_v18 }
 0x326   : > { %1609 = vtanh.f32 %v753_v22  ;;  %v720_v22 = vstv %s719_s15 }
 0x327   : > { %vm722_vm1 = vcmp.gt.s32.totalorder %v1817_v63, %v720_v22  ;;  %vm721_vm4 = vcmp.gt.s32.totalorder %v1800_v52, %v720_v22 }
 0x32a   : > { %v637_v23 = vpop.f32.mrf.mxu2 }
 0x32b   : > { %v1608_v24 = vpop.eup %1607  ;;  %v643_v25 = vadd.f32 %v1537_v21, %v637_v23 }
 0x32c   : > { %658 = vrot.lane.b32.xlu0 %v1608_v24, %s1693_s28  ;;  %v1610_v28 = vpop.eup %1609 }
 0x32d   : > { %1611 = vtanh.f32 %v643_v25  ;;  %v645_v51 = vmul.f32 0.5, %v643_v25  ;;  %v801_v25 = vsel %vm722_vm1, 1, %v1694_v34 }
 0x32e   : > { %1613 = vtanh.f32 %v754_v30 }
 0x32f   : > { %1615 = vtanh.f32 %v644_v48 }
 0x330   : > { %1617 = vtanh.f32 %v755_v49 }
 0x331   : > { %1619 = vtanh.f32 %v645_v51 }
 0x333   : > { %v1612_v29 = vpop.eup %1611 }
 0x334   : > { %770 = vrot.lane.b32.xlu0 %v1610_v28, %s1693_s28  ;;  %660 = vrot.lane.b32.xlu1 %v1612_v29, %s1693_s28  ;;  %v1614_v31 = vpop.eup %1613 }
 0x335   : > { %v758_v35 = vmul.f32 0.5, %v1614_v31  ;;  %v1616_v57 = vpop.eup %1615 }
 0x336   : > { %v648_v58 = vmul.f32 0.5, %v1616_v57  ;;  %v1618_v59 = vpop.eup %1617 }
 0x337   : > { %v1929_v36 = vadd.f32 0.5, %v758_v35  ;;  %v1620_v61 = vpop.eup %1619  ;;  %v759_v5 = vmul.f32 0.5, %v1618_v59 }
 0x338   : > { %v650_v60 = vadd.f32 0.5, %v648_v58  ;;  %v649_v6 = vmul.f32 0.5, %v1620_v61 }
 0x339   : > { %v1937_v7 = vadd.f32 0.5, %v759_v5  ;;  %v764_v13 = vmul.f32 %v1929_v36, %v1841_v32 }
 0x33a   : > { %v651_v8 = vadd.f32 0.5, %v649_v6  ;;  %v654_v24 = vmul.f32 %v650_v60, %v1835_v26 }
 0x33b   : > { %v765_v31 = vmul.f32 %v1937_v7, %v1845_v33 }
 0x33c   : > { %v655_v18 = vmul.f32 %v651_v8, %v1838_v27 }
 0x357   : > { %v769_v37 = vpop.permute.xlu2 %768 }
 0x358   : > { %v774_v38 = vmul.f32 %v769_v37, %v1929_v36 }
 0x35a   : > { %778 = vrot.lane.b32.xlu0 %v774_v38, %s1692_s22 }
 0x362   : > { %693 = vperm.xlu0 %1580, %v690_v41   ;;  %v800_v41 = vsel %vm721_vm4, 1, %v1694_v34 }
 0x39e   : > { %v659_v62 = vpop.permute.xlu0 %658 }
 0x39f   : > { %v664_v4 = vmul.f32 %v659_v62, %v650_v60 }
 0x3a1   : > { %668 = vrot.lane.b32.xlu1 %v664_v4, %s1692_s22 }
 0x3a6   : > { %v771_v9 = vpop.permute.xlu0 %770  ;;  %v661_v10 = vpop.permute.xlu1 %660 }
 0x3a7   : > { %v775_v11 = vmul.f32 %v771_v9, %v1937_v7  ;;  %v665_v12 = vmul.f32 %v661_v10, %v651_v8 }
 0x3a9   : > { %780 = vrot.lane.b32.xlu1 %v775_v11, %s1692_s22  ;;  %670 = vrot.lane.b32.xlu2 %v665_v12, %s1692_s22 }
 0x3cc   : > { %v779_v14 = vpop.permute.xlu0 %778 }
 0x3cd   : > { %v1944_v15 = vadd.f32 %v779_v14, %v764_v13 }
 0x3cf   : > { %1621 = vtanh.f32 %v1944_v15 }
 0x3d4   : > { %v694_v23 = vpop.permute.xlu0 %693 }
 0x3d5   : > { %v1622_v16 = vpop.eup %1621  ;;  %vm698_vm3 = vcmp.eq.s32.totalorder %v694_v23, 1 }
 0x3d6   : > { %790 = vrot.lane.b32.xlu1 %v1622_v16, %s1693_s28  ;;  %vm1976_vm5 = vmpackc.low %vm698_vm3, %vm698_vm3 }
 0x3de   : > { %696 = vperm.xlu1 %1578, %v691_v17  }
 0x403   : > { %v671_v19 = vpop.permute.xlu2 %670 }
 0x404   : > { %v1951_v20 = vadd.f32 %v671_v19, %v655_v18 }
 0x406   : > { %1623 = vtanh.f32 %v1951_v20 }
 0x40c   : > { %v1624_v21 = vpop.eup %1623 }
 0x40d   : > { %682 = vrot.lane.b32.xlu0 %v1624_v21, %s1693_s28 }
 0x413   : > { %v669_v28 = vpop.permute.xlu1 %668 }
 0x414   : > { %v674_v29 = vadd.f32 %v669_v28, %v654_v24 }
 0x415   : > { %806 = vperm.xlu0 %1580, %v801_v25  }
 0x416   : > { %1625 = vtanh.f32 %v674_v29  ;;  %v1961_v30 = vsel %vm698_vm3, %v674_v29, %v1835_v26  ;;  %v1562_v29 = vld [vmem:[%s1751_s10 + $0x8] sm:$0xff]  }
 0x41b   : > { %v781_v35 = vpop.permute.xlu1 %780 }
 0x41c   : > { %v1626_v37 = vpop.eup %1625  ;;  %v1965_v38 = vadd.f32 %v781_v35, %v765_v31  ;;  %v1548_v31 = vunpack.c.l.bf16 %v1562_v29 }
 0x41d   : > { %680 = vrot.lane.b32.xlu2 %v1626_v37, %s1693_s28 }
 0x41e   : > { %1627 = vtanh.f32 %v1965_v38 }
 0x424   : > { %v1628_v39 = vpop.eup %1627 }
 0x425   : > { %792 = vrot.lane.b32.xlu2 %v1628_v39, %s1693_s28  ;;  %v1561_v39 = vld [vmem:[%s1746_s30 + $0x10] sm:$0xff]  }
 0x42d   : > { %803 = vperm.xlu2 %1579, %v800_v41   ;;  %v1544_v41 = vunpack.c.l.bf16 %v1561_v39 }
 0x448   : > { %v791_v26 = vpop.permute.xlu1 %790 }
 0x449   : > { %v796_v9 = vmul.f32 %v791_v26, %v1929_v36 }
 0x44b   : > { %v2018_v16 = vpack.c.bf16 %v796_v9, %v796_v9 }
 0x450   : > { %v1983_v59 = vpop.permute.xlu1 %696 }
 0x451   : > { %vm699_vm6 = vcmp.eq.s32.totalorder %v1983_v59, 1 }
 0x452   : > { %vm1997_vm7 = vmpackc.low %vm699_vm6, %vm699_vm6 }
 0x477   : > { %v681_v48 = vpop.permute.xlu2 %680 }
 0x478   : > { %v686_v49 = vmul.f32 %v681_v48, %v650_v60 }
 0x47a   : > { %v1972_v51 = vpack.c.bf16 %v686_v49, %v686_v49  ;;  %v1549_v49 = vunpack.c.h.bf16 %v1562_v29 }
 0x47c   : > { %v706_v58 = vsel %vm1976_vm5, %v1972_v51, 0  ;;  %v1990_v60 = vsel %vm1976_vm5, %v1972_v51, %v1911_v3 }
 0x47d   : > { %v838_v11 = vunpack.c.l.b16 %v1990_v60 }
 0x47f   : > { %v793_v61 = vpop.permute.xlu2 %792  ;;  %v683_v62 = vpop.permute.xlu0 %682 }
 0x480   : > { %v687_v4 = vmul.f32 %v683_v62, %v651_v8  ;;  %v797_v10 = vmul.f32 %v793_v61, %v1937_v7  ;;  %v1545_v62 = vunpack.c.h.bf16 %v1561_v39 }
 0x482   : > { %v1992_v5 = vpack.c.bf16 %v687_v4, %v687_v4 }
 0x484   : > { %v2006_v8 = vsel %vm1997_vm7, %v1992_v5, %v1916_v55  ;;  %v707_v3 = vsel %vm1997_vm7, %v1992_v5, 0  ;;  %v2022_v55 = vpack.c.bf16 %v797_v10, %v797_v10 }
 0x485   : > { %v839_v12 = vunpack.c.l.b16 %v2006_v8 }
 0x487   : > { %v2014_v13 = vpop.permute.xlu2 %803  ;;  %v2016_v14 = vpop.permute.xlu0 %806  ;;  %v840_v36 = vpack.c.b16 %v839_v12, %v838_v11 }
 0x488   : > { %vm808_vm8 = vcmp.eq.s32.totalorder %v2014_v13, 1  ;;  %vm809_vm9 = vcmp.eq.s32.totalorder %v2016_v14, 1 }
 0x489   : > { %vm2027_vm10 = vmpackc.low %vm808_vm8, %vm808_vm8  ;;  %841 = vrot.lane.b32.xlu1 %v840_v36, %s1692_s22 }
 0x48a   : > { %v2036_v17 = vsel %vm2027_vm10, %v2018_v16, %v1886_v54  ;;  %vm2041_vm15 = vmpackc.low %vm809_vm9, %vm809_vm9  ;;  %v2463_v40 = vsel %vm2027_vm10, %v2018_v16, 0 }
 0x48b   : > { %v948_v21 = vunpack.c.l.b16 %v2036_v17  ;;  %v2053_v22 = vsel %vm2041_vm15, %v2022_v55, %v1891_v56  ;;  %v817_v54 = vsel %vm2041_vm15, %v2022_v55, 0 }
 0x48c   : > { %v949_v23 = vunpack.c.l.b16 %v2053_v22 }
 0x48e   : > { %v950_v24 = vpack.c.b16 %v949_v23, %v948_v21 }
 0x490   : > { %951 = vrot.lane.b32.xlu2 %v950_v24, %s1692_s22 }
 0x4ea   : > { %v952_v25 = vpop.permute.xlu2 %951 }
 0x4eb   : > { %1503 = vmatmul.msk.bf16.vlgmr.msrb.gmra.mxu1 %vm2438_vm2, %v952_v25 }
 0x4fb   : > { %v842_v28 = vpop.permute.xlu1 %841 }
 0x4fc   : > { %1498 = vmatmul.msk.bf16.vlgmr.msrb.gmra.mxu0 %vm2438_vm2, %v842_v28 }
 0x568   : > { %v965_v56 = vpop.f32.mrf.mxu1 }
 0x569   : > { %v972_v35 = vadd.f32 %v1548_v31, %v965_v56  ;;  %v830_v31 = vstv %s829_s17 }
 0x56a   : > { %vm831_vm0 = vcmp.gt.s32.totalorder %v1800_v52, %v830_v31  ;;  %vm832_vm1 = vcmp.gt.s32.totalorder %v1817_v63, %v830_v31 }
 0x56b   : > { %1629 = vtanh.f32 %v972_v35  ;;  %v974_v21 = vmul.f32 0.5, %v972_v35  ;;  %v910_v56 = vsel %vm831_vm0, 1, %v1694_v34 }
 0x570   : > { %v967_v61 = vpop.f32.mrf.mxu1 }
 0x571   : > { %v1630_v37 = vpop.eup %1629  ;;  %v973_v4 = vadd.f32 %v1549_v49, %v967_v61 }
 0x572   : > { %988 = vrot.lane.b32.xlu2 %v1630_v37, %s1693_s28 }
 0x573   : > { %v975_v35 = vmul.f32 0.5, %v973_v4 }
 0x579   : > { %v855_v26 = vpop.f32.mrf.mxu0 }
 0x57a   : > { %v862_v48 = vadd.f32 %v1544_v41, %v855_v26 }
 0x57c   : > { %1631 = vtanh.f32 %v862_v48  ;;  %v864_v37 = vmul.f32 0.5, %v862_v48 }
 0x57d   : > { %1633 = vtanh.f32 %v973_v4 }
 0x581   : > { %v857_v9 = vpop.f32.mrf.mxu0 }
 0x582   : > { %v1632_v10 = vpop.eup %1631  ;;  %v863_v11 = vadd.f32 %v1545_v62, %v857_v9 }
 0x583   : > { %878 = vrot.lane.b32.xlu0 %v1632_v10, %s1693_s28  ;;  %v1634_v12 = vpop.eup %1633 }
 0x584   : > { %1635 = vtanh.f32 %v863_v11  ;;  %v865_v39 = vmul.f32 0.5, %v863_v11 }
 0x585   : > { %1637 = vtanh.f32 %v974_v21 }
 0x586   : > { %1639 = vtanh.f32 %v864_v37 }
 0x587   : > { %1641 = vtanh.f32 %v975_v35 }
 0x588   : > { %1643 = vtanh.f32 %v865_v39  ;;  %v911_v39 = vsel %vm832_vm1, 1, %v1694_v34 }
 0x58a   : > { %v1636_v36 = vpop.eup %1635 }
 0x58b   : > { %880 = vrot.lane.b32.xlu1 %v1636_v36, %s1693_s28  ;;  %990 = vrot.lane.b32.xlu0 %v1634_v12, %s1693_s28  ;;  %v1638_v23 = vpop.eup %1637 }
 0x58c   : > { %v978_v24 = vmul.f32 0.5, %v1638_v23  ;;  %v1640_v41 = vpop.eup %1639 }
 0x58d   : > { %v868_v26 = vmul.f32 0.5, %v1640_v41  ;;  %v1642_v49 = vpop.eup %1641 }
 0x58e   : > { %v2068_v25 = vadd.f32 0.5, %v978_v24  ;;  %v1644_v62 = vpop.eup %1643  ;;  %v979_v12 = vmul.f32 0.5, %v1642_v49  ;;  %v940_v49 = vstv %s939_s18 }
 0x58f   : > { %v870_v61 = vadd.f32 0.5, %v868_v26  ;;  %v869_v36 = vmul.f32 0.5, %v1644_v62  ;;  %vm942_vm3 = vcmp.gt.s32.totalorder %v1817_v63, %v940_v49 }
 0x590   : > { %v2076_v23 = vadd.f32 0.5, %v979_v12 }
 0x591   : > { %v871_v21 = vadd.f32 0.5, %v869_v36  ;;  %v874_v62 = vmul.f32 %v870_v61, %v1961_v30 }
 0x5cc   : > { %v989_v28 = vpop.permute.xlu2 %988 }
 0x5cd   : > { %v994_v29 = vmul.f32 %v989_v28, %v2068_v25  ;;  %v2085_v28 = vsel %vm808_vm8, %v1944_v15, %v1841_v32  ;;  %v2099_v32 = vsel %vm699_vm6, %v1951_v20, %v1838_v27  ;;  %v1021_v27 = vsel %vm942_vm3, 1, %v1694_v34 }
 0x5ce   : > { %v875_v15 = vmul.f32 %v871_v21, %v2099_v32  ;;  %vm941_vm6 = vcmp.gt.s32.totalorder %v1800_v52, %v940_v49 }
 0x5cf   : > { %998 = vrot.lane.b32.xlu0 %v994_v29, %s1692_s22  ;;  %v984_v29 = vmul.f32 %v2068_v25, %v2085_v28 }
 0x5d7   : > { %913 = vperm.xlu0 %1580, %v910_v56  }
 0x5f5   : > { %v879_v9 = vpop.permute.xlu0 %878 }
 0x5f6   : > { %v884_v10 = vmul.f32 %v879_v9, %v870_v61 }
 0x5f8   : > { %888 = vrot.lane.b32.xlu1 %v884_v10, %s1692_s22  ;;  %v2118_v10 = vsel %vm809_vm9, %v1965_v38, %v1845_v33 }
 0x5f9   : > { %v985_v12 = vmul.f32 %v2076_v23, %v2118_v10 }
 0x5fd   : > { %v881_v48 = vpop.permute.xlu1 %880  ;;  %v991_v24 = vpop.permute.xlu0 %990 }
 0x5fe   : > { %v885_v4 = vmul.f32 %v881_v48, %v871_v21  ;;  %v995_v11 = vmul.f32 %v991_v24, %v2076_v23 }
 0x600   : > { %890 = vrot.lane.b32.xlu2 %v885_v4, %s1692_s22  ;;  %1000 = vrot.lane.b32.xlu1 %v995_v11, %s1692_s22 }
 0x641   : > { %v999_v56 = vpop.permute.xlu0 %998 }
 0x642   : > { %v2089_v37 = vadd.f32 %v999_v56, %v984_v29 }
 0x644   : > { %1645 = vtanh.f32 %v2089_v37 }
 0x649   : > { %v914_v31 = vpop.permute.xlu0 %913 }
 0x64a   : > { %v1646_v35 = vpop.eup %1645  ;;  %vm918_vm4 = vcmp.eq.s32.totalorder %v914_v31, 1 }
 0x64b   : > { %1010 = vrot.lane.b32.xlu1 %v1646_v35, %s1693_s28  ;;  %vm2133_vm8 = vmpackc.low %vm918_vm4, %vm918_vm4 }
 0x653   : > { %916 = vperm.xlu1 %1578, %v911_v39  }
 0x65a   : > { %v891_v13 = vpop.permute.xlu2 %890 }
 0x65b   : > { %v2102_v41 = vadd.f32 %v891_v13, %v875_v15 }
 0x65d   : > { %1647 = vtanh.f32 %v2102_v41 }
 0x663   : > { %v1648_v26 = vpop.eup %1647 }
 0x664   : > { %902 = vrot.lane.b32.xlu0 %v1648_v26, %s1693_s28 }
 0x66a   : > { %v889_v20 = vpop.permute.xlu1 %888 }
 0x66b   : > { %v894_v59 = vadd.f32 %v889_v20, %v874_v62 }
 0x66c   : > { %1026 = vperm.xlu0 %1580, %v1021_v27  }
 0x66d   : > { %1649 = vtanh.f32 %v894_v59  ;;  %v2112_v9 = vsel %vm918_vm4, %v894_v59, %v1961_v30  ;;  %v1020_v30 = vsel %vm941_vm6, 1, %v1694_v34 }
 0x672   : > { %v1001_v36 = vpop.permute.xlu1 %1000 }
 0x673   : > { %v1650_v48 = vpop.eup %1649  ;;  %v2122_v24 = vadd.f32 %v1001_v36, %v985_v12 }
 0x674   : > { %900 = vrot.lane.b32.xlu2 %v1650_v48, %s1693_s28 }
 0x675   : > { %1651 = vtanh.f32 %v2122_v24 }
 0x67b   : > { %v1652_v4 = vpop.eup %1651 }
 0x67c   : > { %1012 = vrot.lane.b32.xlu2 %v1652_v4, %s1693_s28 }
 0x684   : > { %1023 = vperm.xlu2 %1579, %v1020_v30  }
 0x6bd   : > { %v1011_v33 = vpop.permute.xlu1 %1010 }
 0x6be   : > { %v1016_v31 = vmul.f32 %v1011_v33, %v2068_v25 }
 0x6c0   : > { %v2175_v36 = vpack.c.bf16 %v1016_v31, %v1016_v31  ;;  %v1555_v31 = vld [vmem:[%s1751_s10] sm:$0xff]   ;;  %s1159_s10 = ssub.s32 4, %s1739_s23 }
 0x6c5   : > { %v2140_v35 = vpop.permute.xlu1 %916 }
 0x6c6   : > { %vm919_vm9 = vcmp.eq.s32.totalorder %v2140_v35, 1 }
 0x6c7   : > { %vm2154_vm0 = vmpackc.low %vm919_vm9, %vm919_vm9  ;;  %v925_v6 = vsel %vm919_vm9, %v2102_v41, %v2099_v32  ;;  %v1160_v32 = vstv %s1159_s10 }
 0x6c8   : > { %vm1162_vm12 = vcmp.gt.s32.totalorder %v1817_v63, %v1160_v32 }
 0x6ce   : > { %v901_v38 = vpop.permute.xlu2 %900 }
 0x6cf   : > { %v906_v14 = vmul.f32 %v901_v38, %v870_v61 }
 0x6d1   : > { %v2129_v11 = vpack.c.bf16 %v906_v14, %v906_v14 }
 0x6d3   : > { %v2147_v61 = vsel %vm2133_vm8, %v2129_v11, %v1990_v60  ;;  %v2464_v42 = vsel %vm2133_vm8, %v2129_v11, 0 }
 0x6d4   : > { %v1058_v27 = vunpack.c.l.b16 %v2147_v61 }
 0x6d6   : > { %v1013_v39 = vpop.permute.xlu2 %1012  ;;  %v903_v15 = vpop.permute.xlu0 %902 }
 0x6d7   : > { %v907_v13 = vmul.f32 %v903_v15, %v871_v21  ;;  %v1017_v62 = vmul.f32 %v1013_v39, %v2076_v23 }
 0x6d9   : > { %v2149_v26 = vpack.c.bf16 %v907_v13, %v907_v13 }
 0x6db   : > { %v2163_v21 = vsel %vm2154_vm0, %v2149_v26, %v2006_v8  ;;  %v2179_v8 = vpack.c.bf16 %v1017_v62, %v1017_v62  ;;  %v1556_v62 = vunpack.c.l.bf16 %v1555_v31 }
 0x6dc   : > { %v1059_v20 = vunpack.c.l.b16 %v2163_v21 }
 0x6de   : > { %v2171_v59 = vpop.permute.xlu2 %1023  ;;  %v2173_v12 = vpop.permute.xlu0 %1026  ;;  %v1060_v25 = vpack.c.b16 %v1059_v20, %v1058_v27 }
 0x6df   : > { %vm1028_vm1 = vcmp.eq.s32.totalorder %v2171_v59, 1  ;;  %vm1029_vm3 = vcmp.eq.s32.totalorder %v2173_v12, 1 }
 0x6e0   : > { %vm2184_vm4 = vmpackc.low %vm1028_vm1, %vm1028_vm1  ;;  %1061 = vrot.lane.b32.xlu1 %v1060_v25, %s1692_s22  ;;  %v1563_v25 = vld [vmem:[%s1746_s30 + $0x18] sm:$0xff]   ;;  %s1049_s30 = sadd.s32 3, %s1739_s23  ;;  %v2293_v44 = vsel %vm1028_vm1, %v2089_v37, %v2085_v28  ;;  %v2465_v28 = vsel %vm2154_vm0, %v2149_v26, 0  ;;  %v1240_v26 = vsel %vm1162_vm12, 1, %v1694_v34  ;;  %vm2470_vm1 = vcmask 261120  }
 0x6e1   : > { %v2193_v48 = vsel %vm2184_vm4, %v2175_v36, %v2036_v17  ;;  %vm2198_vm6 = vmpackc.low %vm1029_vm3, %vm1029_vm3  ;;  %v1552_v30 = vunpack.c.l.bf16 %v1563_v25  ;;  %v1553_v60 = vunpack.c.h.bf16 %v1563_v25 }
 0x6e2   : > { %v1167_v33 = vunpack.c.l.b16 %v2193_v48  ;;  %v2210_v38 = vsel %vm2198_vm6, %v2179_v8, %v2053_v22 }
 0x6e3   : > { %v1168_v14 = vunpack.c.l.b16 %v2210_v38 }
 0x6e5   : > { %v1169_v39 = vpack.c.b16 %v1168_v14, %v1167_v33  ;;  %v1557_v14 = vunpack.c.h.bf16 %v1555_v31 }
 0x6e7   : > { %1170 = vrot.lane.b32.xlu2 %v1169_v39, %s1692_s22 }
 0x741   : > { %v1171_v15 = vpop.permute.xlu2 %1170 }
 0x742   : > { %1511 = vmatmul.msk.bf16.vlgmr.msrb.gmra.mxu3 %vm2438_vm2, %v1171_v15 }
 0x752   : > { %v1062_v13 = vpop.permute.xlu1 %1061 }
 0x753   : > { %1508 = vmatmul.msk.bf16.vlgmr.msrb.gmra.mxu2 %vm2438_vm2, %v1062_v13 }
 0x7c5   : > { %v1184_v22 = vpop.f32.mrf.mxu3 }
 0x7c6   : > { %v1191_v27 = vadd.f32 %v1556_v62, %v1184_v22 }
 0x7c8   : > { %1653 = vtanh.f32 %v1191_v27 }
 0x7cd   : > { %v1186_v39 = vpop.f32.mrf.mxu3 }
 0x7ce   : > { %v1654_v20 = vpop.eup %1653  ;;  %v1192_v15 = vadd.f32 %v1557_v14, %v1186_v39 }
 0x7cf   : > { %1207 = vrot.lane.b32.xlu2 %v1654_v20, %s1693_s28 }
 0x7d0   : > { %v1194_v0 = vmul.f32 0.5, %v1192_v15 }
 0x7d6   : > { %v1075_v17 = vpop.f32.mrf.mxu2 }
 0x7d7   : > { %v1082_v33 = vadd.f32 %v1552_v30, %v1075_v17  ;;  %v1193_v30 = vmul.f32 0.5, %v1191_v27 }
 0x7d9   : > { %1655 = vtanh.f32 %v1082_v33 }
 0x7da   : > { %1657 = vtanh.f32 %v1192_v15 }
 0x7de   : > { %v1077_v56 = vpop.f32.mrf.mxu2 }
 0x7df   : > { %v1656_v19 = vpop.eup %1655  ;;  %v1083_v13 = vadd.f32 %v1553_v60, %v1077_v56  ;;  %v1050_v60 = vstv %s1049_s30 }
 0x7e0   : > { %1098 = vrot.lane.b32.xlu0 %v1656_v19, %s1693_s28  ;;  %v1658_v62 = vpop.eup %1657  ;;  %v1084_v19 = vmul.f32 0.5, %v1082_v33  ;;  %vm1051_vm2 = vcmp.gt.s32.totalorder %v1800_v52, %v1050_v60  ;;  %vm1052_vm11 = vcmp.gt.s32.totalorder %v1817_v63, %v1050_v60 }
 0x7e1   : > { %1659 = vtanh.f32 %v1083_v13  ;;  %v1085_v1 = vmul.f32 0.5, %v1083_v13 }
 0x7e2   : > { %1661 = vtanh.f32 %v1193_v30 }
 0x7e3   : > { %1663 = vtanh.f32 %v1084_v19 }
 0x7e4   : > { %1665 = vtanh.f32 %v1194_v0 }
 0x7e5   : > { %1667 = vtanh.f32 %v1085_v1  ;;  %v2467_v1 = vsel %vm2184_vm4, %v2175_v36, 0  ;;  %vm2472_vm4 = vmmov %vm2470_vm1 }
 0x7e7   : > { %v1660_v22 = vpop.eup %1659 }
 0x7e8   : > { %1100 = vrot.lane.b32.xlu1 %v1660_v22, %s1693_s28  ;;  %1209 = vrot.lane.b32.xlu0 %v1658_v62, %s1693_s28  ;;  %v1662_v17 = vpop.eup %1661 }
 0x7e9   : > { %v1197_v31 = vmul.f32 0.5, %v1662_v17  ;;  %v1664_v57 = vpop.eup %1663  ;;  %v2336_v17 = vsel %vm1029_vm3, %v2122_v24, %v2118_v10  ;;  %vm2471_vm3 = vmmov %vm2470_vm1 }
 0x7ea   : > { %v1088_v51 = vmul.f32 0.5, %v1664_v57 }
 0x7eb   : > { %v2225_v20 = vadd.f32 0.5, %v1197_v31 }
 0x7ec   : > { %v2247_v27 = vadd.f32 0.5, %v1088_v51 }
 0x7ed   : > { %v1203_v46 = vmul.f32 %v2225_v20, %v2293_v44 }
 0x7ee   : > { %v1094_v35 = vmul.f32 %v2247_v27, %v2112_v9 }
 0x829   : > { %v1208_v25 = vpop.permute.xlu2 %1207 }
 0x82a   : > { %v1213_v56 = vmul.f32 %v1208_v25, %v2225_v20 }
 0x82c   : > { %1217 = vrot.lane.b32.xlu0 %v1213_v56, %s1692_s22 }
 0x834   : > { %468 = vrot.lane.b32.xlu0 %v463_v2, %s1692_s22  ;;  %v1130_v2 = vsel %vm1051_vm2, 1, %v1694_v34  ;;  %vm472_vm2 = vcmask 257024  }
 0x83c   : > { %710 = vrot.lane.b32.xlu0 %v706_v58, %s1692_s22  ;;  %v1666_v58 = vpop.eup %1665 }
 0x83d   : > { %v1668_v33 = vpop.eup %1667  ;;  %v1198_v55 = vmul.f32 0.5, %v1666_v58 }
 0x83f   : > { %v2253_v39 = vadd.f32 0.5, %v1198_v55 }
 0x841   : > { %v1204_v31 = vmul.f32 %v2253_v39, %v2336_v17 }
 0x844   : > { %822 = vrot.lane.b32.xlu0 %v817_v54, %s1692_s22  ;;  %v1089_v54 = vmul.f32 0.5, %v1668_v33 }
 0x846   : > { %v2251_v52 = vadd.f32 0.5, %v1089_v54 }
 0x84c   : > { %1133 = vperm.xlu0 %1580, %v1130_v2  }
 0x852   : > { %v1099_v14 = vpop.permute.xlu0 %1098 }
 0x853   : > { %v1104_v18 = vmul.f32 %v1099_v14, %v2247_v27 }
 0x855   : > { %1108 = vrot.lane.b32.xlu1 %v1104_v18, %s1692_s22 }
 0x85a   : > { %v1101_v15 = vpop.permute.xlu1 %1100  ;;  %v1210_v13 = vpop.permute.xlu0 %1209 }
 0x85b   : > { %v1105_v62 = vmul.f32 %v1101_v15, %v2251_v52  ;;  %v1214_v22 = vmul.f32 %v1210_v13, %v2253_v39 }
 0x85d   : > { %1110 = vrot.lane.b32.xlu2 %v1105_v62, %s1692_s22  ;;  %1219 = vrot.lane.b32.xlu1 %v1214_v22, %s1692_s22 }
 0x865   : > { %466 = vrot.lane.b32.xlu2 %v462_v43, %s1692_s22  ;;  %600 = vrot.lane.b32.xlu1 %v596_v47, %s1692_s22 }
 0x86d   : > { %602 = vrot.lane.b32.xlu2 %v597_v53, %s1692_s22  ;;  %712 = vrot.lane.b32.xlu1 %v707_v3, %s1692_s22  ;;  %v1131_v53 = vsel %vm1052_vm11, 1, %v1694_v34  ;;  %v1095_v3 = vmul.f32 %v2251_v52, %v925_v6 }
 0x875   : > { %820 = vrot.lane.b32.xlu2 %v2463_v40, %s1692_s22  ;;  %930 = vrot.lane.b32.xlu1 %v2464_v42, %s1692_s22 }
 0x89e   : > { %v1218_v43 = vpop.permute.xlu0 %1217 }
 0x89f   : > { %v2297_v47 = vadd.f32 %v1218_v43, %v1203_v46 }
 0x8a1   : > { %1669 = vtanh.f32 %v2297_v47 }
 0x8a6   : > { %v469_v45 = vpop.permute.xlu0 %468 }
 0x8a7   : > { %v1670_v50 = vpop.eup %1669  ;;  %474 = vst.msk [vmem:[%s1756_s13 + $0x4] sm:$0xf] %vm472_vm2, %v469_v45 }
 0x8a8   : > { %1229 = vrot.lane.b32.xlu1 %v1670_v50, %s1693_s28 }
 0x8ae   : > { %v711_v5 = vpop.permute.xlu0 %710 }
 0x8af   : > { %1489 = vst.msk [vmem:[%s1756_s13 + $0x8] sm:$0xf] %vm472_vm2, %v711_v5 }
 0x8b0   : > { %1136 = vperm.xlu1 %1578, %v1131_v53  }
 0x8b6   : > { %v823_v37 = vpop.permute.xlu0 %822 }
 0x8b7   : > { %v1111_v16 = vpop.permute.xlu2 %1110  ;;  %1495 = vst.msk [vmem:[%s1761_s16 + $0x14] sm:$0xf] %vm472_vm2, %v823_v37 }
 0x8b8   : > { %v1115_v7 = vadd.f32 %v1111_v16, %v1095_v3  ;;  %932 = vrot.lane.b32.xlu1 %v2465_v28, %s1692_s22 }
 0x8ba   : > { %1671 = vtanh.f32 %v1115_v7 }
 0x8be   : > { %v1134_v41 = vpop.permute.xlu0 %1133 }
 0x8bf   : > { %v467_v11 = vpop.permute.xlu2 %466  ;;  %vm1138_vm13 = vcmp.eq.s32.totalorder %v1134_v41, 1 }
 0x8c0   : > { %v1672_v29 = vpop.eup %1671  ;;  %473 = vst.msk [vmem:[%s1756_s13] sm:$0xf] %vm472_vm2, %v467_v11  ;;  %vm1140_vm7 = vmpackc.low %vm1138_vm13, %vm1138_vm13 }
 0x8c1   : > { %1122 = vrot.lane.b32.xlu0 %v1672_v29, %s1693_s28 }
 0x8c7   : > { %v603_v49 = vpop.permute.xlu2 %602  ;;  %v1109_v59 = vpop.permute.xlu1 %1108 }
 0x8c8   : > { %1485 = vst.msk [vmem:[%s1761_s16 + $0x1c] sm:$0xf] %vm472_vm2, %v603_v49  ;;  %v1114_v30 = vadd.f32 %v1109_v59, %v1094_v35 }
 0x8c9   : > { %1245 = vperm.xlu0 %1580, %v1240_v26  }
 0x8ca   : > { %1673 = vtanh.f32 %v1114_v30  ;;  %v1144_v63 = vsel %vm1138_vm13, %v1114_v30, %v2112_v9  ;;  %v2466_v9 = vsel %vm2198_vm6, %v2179_v8, 0  ;;  %v1677_v8 = vld [vmem:[%s2431_s0] sm:$0xff]  ;;  %vm2473_vm6 = vmmov %vm2470_vm1 }
 0x8cb   : > { %1279 = vrot.lane.b32.xlu1 %v1144_v63, %s1695_s12  ;;  %vm1161_vm14 = vcmp.gt.s32.totalorder %v1677_v8, %v1160_v32 }
 0x8cc   : > { %v1239_v4 = vsel %vm1161_vm14, 1, %v1694_v34 }
 0x8cf   : > { %v1220_v25 = vpop.permute.xlu1 %1219  ;;  %v821_v12 = vpop.permute.xlu2 %820 }
 0x8d0   : > { %v1674_v56 = vpop.eup %1673  ;;  %v2340_v19 = vadd.f32 %v1220_v25, %v1204_v31  ;;  %1494 = vst.msk [vmem:[%s1761_s16 + $0x10] sm:$0xf] %vm472_vm2, %v821_v12 }
 0x8d1   : > { %1042 = vrot.lane.b32.xlu0 %v2466_v9, %s1692_s22  ;;  %1120 = vrot.lane.b32.xlu2 %v1674_v56, %s1693_s28 }
 0x8d2   : > { %1675 = vtanh.f32 %v2340_v19 }
 0x8d7   : > { %v601_v10 = vpop.permute.xlu1 %600 }
 0x8d8   : > { %v1676_v24 = vpop.eup %1675  ;;  %1484 = vst.msk [vmem:[%s1761_s16 + $0x18] sm:$0xf] %vm472_vm2, %v601_v10 }
 0x8d9   : > { %1231 = vrot.lane.b32.xlu2 %v1676_v24, %s1693_s28 }
 0x8df   : > { %v713_v60 = vpop.permute.xlu1 %712 }
 0x8e0   : > { %1490 = vst.msk [vmem:[%s1756_s13 + $0xc] sm:$0xf] %vm472_vm2, %v713_v60 }
 0x8e1   : > { %1242 = vperm.xlu2 %1579, %v1239_v4  }
 0x8e7   : > { %v931_v0 = vpop.permute.xlu1 %930 }
 0x8e8   : > { %1499 = vst.msk [vmem:[%s1756_s13 + $0x10] sm:$0xf] %vm472_vm2, %v931_v0 }
 0x8e9   : > { %1040 = vrot.lane.b32.xlu2 %v2467_v1, %s1692_s22 }
 0x91a   : > { %v1230_v2 = vpop.permute.xlu1 %1229 }
 0x91b   : > { %v1235_v13 = vmul.f32 %v1230_v2, %v2225_v20 }
 0x91d   : > { %v1237_v42 = vpack.c.bf16 %v1235_v13, %v1235_v13 }
 0x922   : > { %v1137_v57 = vpop.permute.xlu1 %1136 }
 0x923   : > { %vm1139_vm5 = vcmp.eq.s32.totalorder %v1137_v57, 1 }
 0x924   : > { %v1145_v51 = vsel %vm1139_vm5, %v1115_v7, %v925_v6  ;;  %vm2380_vm10 = vmpackc.low %vm1139_vm5, %vm1139_vm5 }
 0x925   : > { %1281 = vrot.lane.b32.xlu2 %v1145_v51, %s1695_s12 }
 0x92a   : > { %v933_v34 = vpop.permute.xlu1 %932 }
 0x92b   : > { %1500 = vst.msk [vmem:[%s1756_s13 + $0x14] sm:$0xf] %vm472_vm2, %v933_v34  ;;  %v1121_v58 = vpop.permute.xlu2 %1120 }
 0x92c   : > { %v1126_v33 = vmul.f32 %v1121_v58, %v2247_v27 }
 0x92e   : > { %v1128_v14 = vpack.c.bf16 %v1126_v33, %v1126_v33 }
 0x930   : > { %v1146_v23 = vsel %vm1140_vm7, %v1128_v14, 0  ;;  %v1142_v36 = vsel %vm1140_vm7, %v1128_v14, %v2147_v61 }
 0x931   : > { %1150 = vrot.lane.b32.xlu1 %v1146_v23, %s1692_s22  ;;  %1269 = vrot.lane.b32.xlu2 %v1142_v36, %s1692_s22 }
 0x933   : > { %v1232_v18 = vpop.permute.xlu2 %1231  ;;  %v1123_v55 = vpop.permute.xlu0 %1122 }
 0x934   : > { %v1127_v54 = vmul.f32 %v1123_v55, %v2251_v52  ;;  %v1236_v62 = vmul.f32 %v1232_v18, %v2253_v39 }
 0x936   : > { %v1129_v15 = vpack.c.bf16 %v1127_v54, %v1127_v54  ;;  %v1238_v52 = vpack.c.bf16 %v1236_v62, %v1236_v62 }
 0x938   : > { %v1147_v61 = vsel %vm2380_vm10, %v1129_v15, 0 }
 0x939   : > { %1152 = vrot.lane.b32.xlu2 %v1147_v61, %s1692_s22 }
 0x93b   : > { %v1243_v22 = vpop.permute.xlu2 %1242  ;;  %v1246_v40 = vpop.permute.xlu0 %1245 }
 0x93c   : > { %vm1247_vm15 = vcmp.eq.s32.totalorder %v1243_v22, 1  ;;  %vm1248_vm8 = vcmp.eq.s32.totalorder %v1246_v40, 1 }
 0x93d   : > { %vm1249_vm9 = vmpackc.low %vm1247_vm15, %vm1247_vm15  ;;  %v1280_v46 = vpop.permute.xlu1 %1279  ;;  %v1253_v43 = vsel %vm1247_vm15, %v2297_v47, %v2293_v44  ;;  %v1143_v44 = vsel %vm2380_vm10, %v1129_v15, %v2163_v21  ;;  %v1254_v47 = vsel %vm1248_vm8, %v2340_v19, %v2336_v17 }
 0x93e   : > { %vm1250_vm0 = vmpackc.low %vm1248_vm8, %vm1248_vm8  ;;  %1285 = vst.msk [vmem:[#allocation3] sm:$0xff] %vm2470_vm1, %v1280_v46  ;;  %v1255_v20 = vsel %vm1249_vm9, %v1237_v42, 0  ;;  %v1251_v53 = vsel %vm1249_vm9, %v1237_v42, %v2193_v48 }
 0x93f   : > { %1259 = vrot.lane.b32.xlu0 %v1255_v20, %s1692_s22  ;;  %v1256_v39 = vsel %vm1250_vm0, %v1238_v52, 0  ;;  %v1252_v5 = vsel %vm1250_vm0, %v1238_v52, %v2210_v38 }
 0x940   : > { %1261 = vrot.lane.b32.xlu1 %v1256_v39, %s1692_s22 }
 0x941   : > { %1299 = vrot.lane.b32.xlu2 %v1253_v43, %s1695_s12 }
 0x943   : > { %v1041_v45 = vpop.permute.xlu2 %1040  ;;  %v1043_v50 = vpop.permute.xlu0 %1042 }
 0x944   : > { %1504 = vst.msk [vmem:[%s1761_s16 + $0x8] sm:$0xf] %vm472_vm2, %v1041_v45 }
 0x945   : > { %1505 = vst.msk [vmem:[%s1761_s16 + $0xc] sm:$0xf] %vm472_vm2, %v1043_v50 }
 0x947   : > { %1289 = vrot.lane.b32.xlu0 %v1251_v53, %s1692_s22 }
 0x948   : > { %1291 = vrot.lane.b32.xlu1 %v1252_v5, %s1692_s22 }
 0x94f   : > { %1271 = vrot.lane.b32.xlu0 %v1143_v44, %s1692_s22 }
 0x957   : > { %1301 = vrot.lane.b32.xlu0 %v1254_v47, %s1695_s12 }
 0x97f   : > { %v1282_v48 = vpop.permute.xlu2 %1281 }
 0x980   : > { %1286 = vst.msk [vmem:[#allocation3 + $0x8] sm:$0xff] %vm2471_vm3, %v1282_v48 }
 0x98b   : > { %v1270_v38 = vpop.permute.xlu2 %1269 }
 0x98c   : > { %1275 = vst.msk [vmem:[#allocation2] sm:$0xf] %vm472_vm2, %v1270_v38 }
 0x993   : > { %v1153_v6 = vpop.permute.xlu2 %1152 }
 0x994   : > { %1510 = vst.msk [vmem:[%s1756_s13 + $0x1c] sm:$0xf] %vm472_vm2, %v1153_v6 }
 0x99b   : > { %v1300_v21 = vpop.permute.xlu2 %1299 }
 0x99c   : > { %1305 = vst.msk [vmem:[#allocation5] sm:$0xff] %vm2472_vm4, %v1300_v21 }
 0x9a3   : > { %v1151_v3 = vpop.permute.xlu1 %1150 }
 0x9a4   : > { %1509 = vst.msk [vmem:[%s1756_s13 + $0x18] sm:$0xf] %vm472_vm2, %v1151_v3 }
 0x9b1   : > { %v1260_v16 = vpop.permute.xlu0 %1259 }
 0x9b2   : > { %v1262_v7 = vpop.permute.xlu1 %1261  ;;  %1265 = vst.msk [vmem:[%s1761_s16] sm:$0xf] %vm472_vm2, %v1260_v16 }
 0x9b3   : > { %1266 = vst.msk [vmem:[%s1761_s16 + $0x4] sm:$0xf] %vm472_vm2, %v1262_v7 }
 0x9b9   : > { %v1290_v28 = vpop.permute.xlu0 %1289 }
 0x9ba   : > { %v1292_v37 = vpop.permute.xlu1 %1291  ;;  %1295 = vst.msk [vmem:[#allocation4] sm:$0xf] %vm472_vm2, %v1290_v28 }
 0x9bb   : > { %1296 = vst.msk [vmem:[#allocation4 + $0x4] sm:$0xf] %vm472_vm2, %v1292_v37 }
 0x9c1   : > { %v1272_v11 = vpop.permute.xlu0 %1271 }
 0x9c2   : > { %1276 = vst.msk [vmem:[#allocation2 + $0x4] sm:$0xf] %vm472_vm2, %v1272_v11 }
 0x9c9   : > { %v1302_v29 = vpop.permute.xlu0 %1301 }
 0x9ca   : > { %1306 = vst.msk [vmem:[#allocation5 + $0x8] sm:$0xff] %vm2473_vm6, %v1302_v29 }
 0x9cb PF: > { %s17_s21 = sadd.s32 1, %s1688_s21  }
 0x9cc   : > { %p14_p6 = scmp.ge.s32.totalorder %s17_s21, 4  }
 0x9ce   :  { %16 = sbr.rel (!%p14_p6) target bundleno = 1 (0x1), region = 141 }
 0x9d3   :  { %1353 = vsyncmov [#allocation8] }
 0x9d6   :  { %s1354_s13 = vpop.sfrf %1353 }
 0x9d7   :  { %p1514_p7 = scmp.ne.s32.totalorder %s1354_s13, 0 }
 0x9d9   :  { %1358 = shalt.err (%p1514_p7)  }
 0x9da   :  { %1360 = vsyncmov [#allocation8 + $0x1] }
 0x9dd   :  { %s1361_s16 = vpop.sfrf %1360 }
 0x9de   :  { %p1515_p8 = scmp.ne.s32.totalorder %s1361_s16, 0 }
 0x9e0   :  { %1365 = shalt.err (%p1515_p8)  }

</bundles_post_ra>
